<compile_context>
chip_gen: v7x
topology: tpu7x:2x2x1
jax: 0.10.0
libtpu: 0.0.40
codegen_flags: <defaults>
</compile_context>

<pallas_src>
import functools

import jax
import jax.numpy as jnp
from jax.experimental import pallas as pl
from jax.experimental.pallas import tpu as pltpu


def _depthwise3x3(x, taps, masks, *, W, N):
    """3x3 depthwise conv (bias folded away), padding=1, stride=1.

    x:     (C, N) with N = H*W row-major (lanes).
    taps:  (C, 9) per-channel 3x3 weights.
    masks: (9, N) f32 precomputed boundary masks (they also cancel the
           wraparound of the lane rotate).
    """
    acc = x * taps[:, 4:5]                                    # center tap: mask == 1
    for k in range(9):
        if k == 4:
            continue
        dy, dx = k // 3 - 1, k % 3 - 1
        off = dy * W + dx
        shifted = pltpu.roll(x, (-off) % N, axis=1)           # XLU lane rotate
        acc = acc + (shifted * masks[k:k + 1, :]) * taps[:, k:k + 1]
    return acc


def resnet_block_se_kernel(x_ref, masks_ref, dw1_ref, dw2_ref,
                           wc_ref, cc_ref, w2_ref, chanv_ref, se1b_ref,
                           o_ref, *, W, C_out, Cr):
    N = x_ref.shape[-1]
    x = x_ref[0].astype(jnp.float32)                          # (C_in, N)
    masks = masks_ref[...]                                    # (9, N)

    # conv1 depthwise 3x3 (bias folded into the pointwise shift).
    d1 = _depthwise3x3(x, dw1_ref[...], masks, W=W, N=N)      # (C_in, N)

    # One fused MXU matmul: block-diag([pw1*bn1, ds*bnds]) @ [d1; x].
    xin = jnp.concatenate([d1, x], axis=0)                    # (2*C_in, N)
    y = jnp.dot(wc_ref[...], xin,
                preferred_element_type=jnp.float32) + cc_ref[...]
    a1 = jnp.maximum(y[:C_out], 0.0)                          # bn1 + relu folded
    idn = y[C_out:]                                           # shortcut + bnds folded

    # conv2 depthwise 3x3 + pointwise 1x1 (+ bn2 folded into w2 / c2).
    d2 = _depthwise3x3(a1, dw2_ref[...], masks, W=W, N=N)
    c2 = chanv_ref[:, 0:1]                                    # (C_out, 1)
    se2b = chanv_ref[:, 1:2]                                  # (C_out, 1)
    se1wt = chanv_ref[:, 2:2 + Cr]                            # (C_out, Cr)
    se2w = chanv_ref[:, 2 + Cr:2 + 2 * Cr]                    # (C_out, Cr)
    a2 = jnp.dot(w2_ref[...], d2,
                 preferred_element_type=jnp.float32) + c2     # (C_out, N)

    # Squeeze-and-Excitation: global mean over spatial lanes + two tiny FCs
    # expressed as elementwise mul + cross-sublane / cross-lane reductions.
    ymean = jnp.mean(a2, axis=1, keepdims=True)               # (C_out, 1)
    h = jnp.sum(se1wt * ymean, axis=0, keepdims=True) + se1b_ref[...]
    h = jnp.maximum(h, 0.0)                                   # (1, Cr)
    g = jnp.sum(se2w * h, axis=1, keepdims=True) + se2b       # (C_out, 1)
    g = 1.0 / (1.0 + jnp.exp(-g))                             # sigmoid gate

    o_ref[0] = jnp.maximum(a2 * g + idn, 0.0).astype(o_ref.dtype)


def resnet_block_se(x, params, *, eps=1e-5):
    """x: (B, C_in, H, W) f32. Eval-mode forward of ResNetBlockSE (stride=1)."""
    B, C_in, H, W = x.shape
    N = H * W
    C_out = params["pw1_w"].shape[0]
    Cr = params["se1_w"].shape[0]
    f32 = jnp.float32

    def bn_scale_shift(prefix):
        g = params[prefix + "_gamma"]
        b = params[prefix + "_beta"]
        m = params[prefix + "_mean"]
        v = params[prefix + "_var"]
        s = g / jnp.sqrt(v + eps)
        return s, b - m * s

    s1, b1 = bn_scale_shift("bn1")
    s2, b2 = bn_scale_shift("bn2")
    sd, bd = bn_scale_shift("bnds")

    pw1 = params["pw1_w"].reshape(C_out, C_in)
    pw2 = params["pw2_w"].reshape(C_out, C_out)
    dsw = params["ds_w"].reshape(C_out, C_in)

    # Fold depthwise/pointwise biases and BN scale/shift into the 1x1 weights.
    W1p = pw1 * s1[:, None]
    c1 = s1 * (params["pw1_b"] + pw1 @ params["dw1_b"]) + b1
    W2p = pw2 * s2[:, None]
    c2 = s2 * (params["pw2_b"] + pw2 @ params["dw2_b"]) + b2
    Wdp = dsw * sd[:, None]
    cd = sd * params["ds_b"] + bd

    # Block-diagonal fusion of pointwise-1 and projection shortcut.
    w_combo = jnp.zeros((2 * C_out, 2 * C_in), f32)
    w_combo = w_combo.at[:C_out, :C_in].set(W1p)
    w_combo = w_combo.at[C_out:, C_in:].set(Wdp)
    c_combo = jnp.concatenate([c1, cd]).reshape(2 * C_out, 1)

    # Pack remaining per-C_out-channel vectors into one small array.
    chanv = jnp.concatenate(
        [c2[:, None], params["se2_b"][:, None],
         params["se1_w"].T, params["se2_w"]], axis=1)         # (C_out, 2+2*Cr)
    se1b = params["se1_b"].reshape(1, Cr)

    dw1_taps = params["dw1_w"].reshape(C_in, 9)
    dw2_taps = params["dw2_w"].reshape(C_out, 9)

    # Precomputed 3x3 boundary masks, shared by both depthwise convs.
    n = jnp.arange(N)
    hh, ww = n // W, n % W
    rows = []
    for ky in range(3):
        for kx in range(3):
            dy, dx = ky - 1, kx - 1
            ok = ((hh + dy >= 0) & (hh + dy < H) &
                  (ww + dx >= 0) & (ww + dx < W))
            rows.append(ok.astype(f32))
    masks = jnp.stack(rows, axis=0)                           # (9, N)

    args = [masks, dw1_taps, dw2_taps, w_combo, c_combo, W2p, chanv, se1b]

    x_flat = x.reshape(B, C_in, N)                            # free reshape, no HBM transpose
    in_specs = ([pl.BlockSpec((1, C_in, N), lambda b: (b, 0, 0))] +
                [pl.BlockSpec(a.shape, lambda b: (0, 0)) for a in args])
    out_spec = pl.BlockSpec((1, C_out, N), lambda b: (b, 0, 0))

    kern = functools.partial(resnet_block_se_kernel, W=W, C_out=C_out, Cr=Cr)

    out_flat = pl.pallas_call(
        kern,
        out_shape=jax.ShapeDtypeStruct((B, C_out, N), x.dtype),
        grid_spec=pltpu.PrefetchScalarGridSpec(
            num_scalar_prefetch=0,
            grid=(B,),
            in_specs=in_specs,
            out_specs=out_spec,
        ),
        compiler_params=pltpu.CompilerParams(
            dimension_semantics=("parallel",)),
    )(x_flat, *args)

    return out_flat.reshape(B, C_out, H, W)


def reference_forward(x, params, *, eps=1e-5):
    """Pure-JAX/XLA reference mirroring the PyTorch forward (eval mode)."""
    C_in = x.shape[1]

    def conv(z, w, b, *, padding, groups=1):
        y = jax.lax.conv_general_dilated(
            z, w, window_strides=(1, 1),
            padding=((padding, padding), (padding, padding)),
            dimension_numbers=("NCHW", "OIHW", "NCHW"),
            feature_group_count=groups)
        return y + b.reshape(1, -1, 1, 1)

    def bn(z, prefix):
        g = params[prefix + "_gamma"].reshape(1, -1, 1, 1)
        b = params[prefix + "_beta"].reshape(1, -1, 1, 1)
        m = params[prefix + "_mean"].reshape(1, -1, 1, 1)
        v = params[prefix + "_var"].reshape(1, -1, 1, 1)
        return (z - m) / jnp.sqrt(v + eps) * g + b

    C_out = params["pw1_w"].shape[0]
    out = conv(x, params["dw1_w"], params["dw1_b"], padding=1, groups=C_in)
    out = conv(out, params["pw1_w"], params["pw1_b"], padding=0)
    out = jax.nn.relu(bn(out, "bn1"))
    out = conv(out, params["dw2_w"], params["dw2_b"], padding=1, groups=C_out)
    out = conv(out, params["pw2_w"], params["pw2_b"], padding=0)
    out = bn(out, "bn2")
    y = out.mean(axis=(2, 3))
    y = jax.nn.relu(y @ params["se1_w"].T + params["se1_b"])
    y = jax.nn.sigmoid(y @ params["se2_w"].T + params["se2_b"])
    out = out * y[:, :, None, None]
    identity = conv(x, params["ds_w"], params["ds_b"], padding=0)
    identity = bn(identity, "bnds")
    return jax.nn.relu(out + identity)


def init_params(key, C_in, C_out, reduction=16):
    Cr = max(C_out // reduction, 1)
    ks = jax.random.split(key, 26)
    n = lambda k, shape, s=0.1: s * jax.random.normal(k, shape, jnp.float32)
    u = lambda k, shape, lo, hi: jax.random.uniform(k, shape, jnp.float32, lo, hi)
    return {
        "dw1_w": n(ks[0], (C_in, 1, 3, 3), 0.3), "dw1_b": n(ks[1], (C_in,)),
        "pw1_w": n(ks[2], (C_out, C_in, 1, 1), 0.2), "pw1_b": n(ks[3], (C_out,)),
        "bn1_gamma": u(ks[4], (C_out,), 0.8, 1.2), "bn1_beta": n(ks[5], (C_out,)),
        "bn1_mean": n(ks[6], (C_out,)), "bn1_var": u(ks[7], (C_out,), 0.5, 1.5),
        "dw2_w": n(ks[8], (C_out, 1, 3, 3), 0.3), "dw2_b": n(ks[9], (C_out,)),
        "pw2_w": n(ks[10], (C_out, C_out, 1, 1), 0.2), "pw2_b": n(ks[11], (C_out,)),
        "bn2_gamma": u(ks[12], (C_out,), 0.8, 1.2), "bn2_beta": n(ks[13], (C_out,)),
        "bn2_mean": n(ks[14], (C_out,)), "bn2_var": u(ks[15], (C_out,), 0.5, 1.5),
        "se1_w": n(ks[16], (Cr, C_out), 0.3), "se1_b": n(ks[17], (Cr,)),
        "se2_w": n(ks[18], (C_out, Cr), 0.3), "se2_b": n(ks[19], (C_out,)),
        "ds_w": n(ks[20], (C_out, C_in, 1, 1), 0.2), "ds_b": n(ks[21], (C_out,)),
        "bnds_gamma": u(ks[22], (C_out,), 0.8, 1.2), "bnds_beta": n(ks[23], (C_out,)),
        "bnds_mean": n(ks[24], (C_out,)), "bnds_var": u(ks[25], (C_out,), 0.5, 1.5),
    }


if __name__ == "__main__":
    # ResNetBlockSE(in_channels=16, out_channels=32, downsample=False)
    # -> projection shortcut (1x1 conv + BN) since in_channels != out_channels.
    B, C_in, C_out, H, W = 2, 16, 32, 16, 16

    key = jax.random.PRNGKey(0)
    k_x, k_p = jax.random.split(key)
    x = jax.random.normal(k_x, (B, C_in, H, W), jnp.float32)
    params = init_params(k_p, C_in, C_out)

    out = resnet_block_se(x, params)
    out = jax.block_until_ready(out)

    ref = reference_forward(x, params)
    assert out.shape == (B, C_out, H, W)
    max_err = float(jnp.max(jnp.abs(out - ref)))
    assert jnp.allclose(out, ref, atol=2e-3, rtol=2e-3), (
        f"mismatch vs reference, max abs err={max_err}")

    print("KERNEL_OK")
</pallas_src>

<mosaic_0001>
module attributes {stable_mosaic.version = 11 : i64} {
  func.func @resnet_block_se_kernel(%arg0: i32, %arg1: memref<1x16x256xf32, #tpu.memory_space<vmem>>, %arg2: memref<9x256xf32, #tpu.memory_space<vmem>>, %arg3: memref<16x9xf32, #tpu.memory_space<vmem>>, %arg4: memref<32x9xf32, #tpu.memory_space<vmem>>, %arg5: memref<64x32xf32, #tpu.memory_space<vmem>>, %arg6: memref<64x1xf32, #tpu.memory_space<vmem>>, %arg7: memref<32x32xf32, #tpu.memory_space<vmem>>, %arg8: memref<32x6xf32, #tpu.memory_space<vmem>>, %arg9: memref<1x2xf32, #tpu.memory_space<vmem>>, %arg10: memref<1x32x256xf32, #tpu.memory_space<vmem>>) attributes {dimension_semantics = [#tpu.dimension_semantics<parallel>], iteration_bounds = array<i64: 2>, scalar_prefetch = 0 : i64, scratch_operands = 0 : i64, tpu.core_type = #tpu.core_type<tc>, window_params = [{transform_indices = @transform_0, window_bounds = array<i64: 1, 16, 256>}, {pipeline_mode = #tpu.pipeline_mode<synchronous>, transform_indices = @transform_1, window_bounds = array<i64: 9, 256>}, {pipeline_mode = #tpu.pipeline_mode<synchronous>, transform_indices = @transform_2, window_bounds = array<i64: 16, 9>}, {pipeline_mode = #tpu.pipeline_mode<synchronous>, transform_indices = @transform_3, window_bounds = array<i64: 32, 9>}, {pipeline_mode = #tpu.pipeline_mode<synchronous>, transform_indices = @transform_4, window_bounds = array<i64: 64, 32>}, {pipeline_mode = #tpu.pipeline_mode<synchronous>, transform_indices = @transform_5, window_bounds = array<i64: 64, 1>}, {pipeline_mode = #tpu.pipeline_mode<synchronous>, transform_indices = @transform_6, window_bounds = array<i64: 32, 32>}, {pipeline_mode = #tpu.pipeline_mode<synchronous>, transform_indices = @transform_7, window_bounds = array<i64: 32, 6>}, {pipeline_mode = #tpu.pipeline_mode<synchronous>, transform_indices = @transform_8, window_bounds = array<i64: 1, 2>}, {transform_indices = @transform_9, window_bounds = array<i64: 1, 32, 256>}]} {
    %c0 = arith.constant 0 : index
    %c0_0 = arith.constant 0 : index
    %c0_1 = arith.constant 0 : index
    %0 = vector.load %arg1[%c0, %c0_0, %c0_1] : memref<1x16x256xf32, #tpu.memory_space<vmem>>, vector<1x16x256xf32>
    %1 = vector.shape_cast %0 : vector<1x16x256xf32> to vector<16x256xf32>
    %c0_2 = arith.constant 0 : index
    %c0_3 = arith.constant 0 : index
    %2 = vector.load %arg2[%c0_2, %c0_3] : memref<9x256xf32, #tpu.memory_space<vmem>>, vector<9x256xf32>
    %c0_4 = arith.constant 0 : index
    %c0_5 = arith.constant 0 : index
    %3 = vector.load %arg3[%c0_4, %c0_5] : memref<16x9xf32, #tpu.memory_space<vmem>>, vector<16x9xf32>
    %4 = vector.extract_strided_slice %3 {offsets = [0, 4], sizes = [16, 1], strides = [1, 1]} : vector<16x9xf32> to vector<16x1xf32>
    %5 = vector.broadcast %4 : vector<16x1xf32> to vector<16x256xf32>
    %6 = arith.mulf %1, %5 : vector<16x256xf32>
    %c17_i32 = arith.constant 17 : i32
    %7 = tpu.dynamic_rotate %1 by %c17_i32 dim 1 : vector<16x256xf32>, i32 -> vector<16x256xf32>
    %8 = vector.extract_strided_slice %2 {offsets = [0, 0], sizes = [1, 256], strides = [1, 1]} : vector<9x256xf32> to vector<1x256xf32>
    %9 = vector.broadcast %8 : vector<1x256xf32> to vector<16x256xf32>
    %10 = arith.mulf %7, %9 : vector<16x256xf32>
    %11 = vector.extract_strided_slice %3 {offsets = [0, 0], sizes = [16, 1], strides = [1, 1]} : vector<16x9xf32> to vector<16x1xf32>
    %12 = vector.broadcast %11 : vector<16x1xf32> to vector<16x256xf32>
    %13 = arith.mulf %10, %12 : vector<16x256xf32>
    %14 = arith.addf %6, %13 : vector<16x256xf32>
    %c16_i32 = arith.constant 16 : i32
    %15 = tpu.dynamic_rotate %1 by %c16_i32 dim 1 : vector<16x256xf32>, i32 -> vector<16x256xf32>
    %16 = vector.extract_strided_slice %2 {offsets = [1, 0], sizes = [1, 256], strides = [1, 1]} : vector<9x256xf32> to vector<1x256xf32>
    %17 = vector.broadcast %16 : vector<1x256xf32> to vector<16x256xf32>
    %18 = arith.mulf %15, %17 : vector<16x256xf32>
    %19 = vector.extract_strided_slice %3 {offsets = [0, 1], sizes = [16, 1], strides = [1, 1]} : vector<16x9xf32> to vector<16x1xf32>
    %20 = vector.broadcast %19 : vector<16x1xf32> to vector<16x256xf32>
    %21 = arith.mulf %18, %20 : vector<16x256xf32>
    %22 = arith.addf %14, %21 : vector<16x256xf32>
    %c15_i32 = arith.constant 15 : i32
    %23 = tpu.dynamic_rotate %1 by %c15_i32 dim 1 : vector<16x256xf32>, i32 -> vector<16x256xf32>
    %24 = vector.extract_strided_slice %2 {offsets = [2, 0], sizes = [1, 256], strides = [1, 1]} : vector<9x256xf32> to vector<1x256xf32>
    %25 = vector.broadcast %24 : vector<1x256xf32> to vector<16x256xf32>
    %26 = arith.mulf %23, %25 : vector<16x256xf32>
    %27 = vector.extract_strided_slice %3 {offsets = [0, 2], sizes = [16, 1], strides = [1, 1]} : vector<16x9xf32> to vector<16x1xf32>
    %28 = vector.broadcast %27 : vector<16x1xf32> to vector<16x256xf32>
    %29 = arith.mulf %26, %28 : vector<16x256xf32>
    %30 = arith.addf %22, %29 : vector<16x256xf32>
    %c1_i32 = arith.constant 1 : i32
    %31 = tpu.dynamic_rotate %1 by %c1_i32 dim 1 : vector<16x256xf32>, i32 -> vector<16x256xf32>
    %32 = vector.extract_strided_slice %2 {offsets = [3, 0], sizes = [1, 256], strides = [1, 1]} : vector<9x256xf32> to vector<1x256xf32>
    %33 = vector.broadcast %32 : vector<1x256xf32> to vector<16x256xf32>
    %34 = arith.mulf %31, %33 : vector<16x256xf32>
    %35 = vector.extract_strided_slice %3 {offsets = [0, 3], sizes = [16, 1], strides = [1, 1]} : vector<16x9xf32> to vector<16x1xf32>
    %36 = vector.broadcast %35 : vector<16x1xf32> to vector<16x256xf32>
    %37 = arith.mulf %34, %36 : vector<16x256xf32>
    %38 = arith.addf %30, %37 : vector<16x256xf32>
    %c255_i32 = arith.constant 255 : i32
    %39 = tpu.dynamic_rotate %1 by %c255_i32 dim 1 : vector<16x256xf32>, i32 -> vector<16x256xf32>
    %40 = vector.extract_strided_slice %2 {offsets = [5, 0], sizes = [1, 256], strides = [1, 1]} : vector<9x256xf32> to vector<1x256xf32>
    %41 = vector.broadcast %40 : vector<1x256xf32> to vector<16x256xf32>
    %42 = arith.mulf %39, %41 : vector<16x256xf32>
    %43 = vector.extract_strided_slice %3 {offsets = [0, 5], sizes = [16, 1], strides = [1, 1]} : vector<16x9xf32> to vector<16x1xf32>
    %44 = vector.broadcast %43 : vector<16x1xf32> to vector<16x256xf32>
    %45 = arith.mulf %42, %44 : vector<16x256xf32>
    %46 = arith.addf %38, %45 : vector<16x256xf32>
    %c241_i32 = arith.constant 241 : i32
    %47 = tpu.dynamic_rotate %1 by %c241_i32 dim 1 : vector<16x256xf32>, i32 -> vector<16x256xf32>
    %48 = vector.extract_strided_slice %2 {offsets = [6, 0], sizes = [1, 256], strides = [1, 1]} : vector<9x256xf32> to vector<1x256xf32>
    %49 = vector.broadcast %48 : vector<1x256xf32> to vector<16x256xf32>
    %50 = arith.mulf %47, %49 : vector<16x256xf32>
    %51 = vector.extract_strided_slice %3 {offsets = [0, 6], sizes = [16, 1], strides = [1, 1]} : vector<16x9xf32> to vector<16x1xf32>
    %52 = vector.broadcast %51 : vector<16x1xf32> to vector<16x256xf32>
    %53 = arith.mulf %50, %52 : vector<16x256xf32>
    %54 = arith.addf %46, %53 : vector<16x256xf32>
    %c240_i32 = arith.constant 240 : i32
    %55 = tpu.dynamic_rotate %1 by %c240_i32 dim 1 : vector<16x256xf32>, i32 -> vector<16x256xf32>
    %56 = vector.extract_strided_slice %2 {offsets = [7, 0], sizes = [1, 256], strides = [1, 1]} : vector<9x256xf32> to vector<1x256xf32>
    %57 = vector.broadcast %56 : vector<1x256xf32> to vector<16x256xf32>
    %58 = arith.mulf %55, %57 : vector<16x256xf32>
    %59 = vector.extract_strided_slice %3 {offsets = [0, 7], sizes = [16, 1], strides = [1, 1]} : vector<16x9xf32> to vector<16x1xf32>
    %60 = vector.broadcast %59 : vector<16x1xf32> to vector<16x256xf32>
    %61 = arith.mulf %58, %60 : vector<16x256xf32>
    %62 = arith.addf %54, %61 : vector<16x256xf32>
    %c239_i32 = arith.constant 239 : i32
    %63 = tpu.dynamic_rotate %1 by %c239_i32 dim 1 : vector<16x256xf32>, i32 -> vector<16x256xf32>
    %64 = vector.extract_strided_slice %2 {offsets = [8, 0], sizes = [1, 256], strides = [1, 1]} : vector<9x256xf32> to vector<1x256xf32>
    %65 = vector.broadcast %64 : vector<1x256xf32> to vector<16x256xf32>
    %66 = arith.mulf %63, %65 : vector<16x256xf32>
    %67 = vector.extract_strided_slice %3 {offsets = [0, 8], sizes = [16, 1], strides = [1, 1]} : vector<16x9xf32> to vector<16x1xf32>
    %68 = vector.broadcast %67 : vector<16x1xf32> to vector<16x256xf32>
    %69 = arith.mulf %66, %68 : vector<16x256xf32>
    %70 = arith.addf %62, %69 : vector<16x256xf32>
    %71 = tpu.concatenate %70, %1 in 0 : vector<16x256xf32>, vector<16x256xf32> -> vector<32x256xf32>
    %c0_6 = arith.constant 0 : index
    %c0_7 = arith.constant 0 : index
    %72 = vector.load %arg5[%c0_6, %c0_7] : memref<64x32xf32, #tpu.memory_space<vmem>>, vector<64x32xf32>
    %cst = arith.constant dense<0.000000e+00> : vector<64x256xf32>
    %73 = tpu.matmul %72, %71, %cst {dimension_numbers = #tpu.dot_dimension_numbers<[1], [0], [0], [1], [0, 0, 1, 1], [], []>} : vector<64x32xf32>, vector<32x256xf32>, vector<64x256xf32> -> vector<64x256xf32>
    %c0_8 = arith.constant 0 : index
    %c0_9 = arith.constant 0 : index
    %74 = vector.load %arg6[%c0_8, %c0_9] : memref<64x1xf32, #tpu.memory_space<vmem>>, vector<64x1xf32>
    %75 = vector.broadcast %74 : vector<64x1xf32> to vector<64x256xf32>
    %76 = arith.addf %73, %75 : vector<64x256xf32>
    %77 = vector.extract_strided_slice %76 {offsets = [0, 0], sizes = [32, 256], strides = [1, 1]} : vector<64x256xf32> to vector<32x256xf32>
    %cst_10 = arith.constant 0.000000e+00 : f32
    %78 = vector.broadcast %cst_10 : f32 to vector<32x256xf32>
    %79 = arith.maximumf %77, %78 : vector<32x256xf32>
    %80 = vector.extract_strided_slice %76 {offsets = [32, 0], sizes = [32, 256], strides = [1, 1]} : vector<64x256xf32> to vector<32x256xf32>
    %c0_11 = arith.constant 0 : index
    %c0_12 = arith.constant 0 : index
    %81 = vector.load %arg4[%c0_11, %c0_12] : memref<32x9xf32, #tpu.memory_space<vmem>>, vector<32x9xf32>
    %82 = vector.extract_strided_slice %81 {offsets = [0, 4], sizes = [32, 1], strides = [1, 1]} : vector<32x9xf32> to vector<32x1xf32>
    %83 = vector.broadcast %82 : vector<32x1xf32> to vector<32x256xf32>
    %84 = arith.mulf %79, %83 : vector<32x256xf32>
    %c17_i32_13 = arith.constant 17 : i32
    %85 = tpu.dynamic_rotate %79 by %c17_i32_13 dim 1 : vector<32x256xf32>, i32 -> vector<32x256xf32>
    %86 = vector.extract_strided_slice %2 {offsets = [0, 0], sizes = [1, 256], strides = [1, 1]} : vector<9x256xf32> to vector<1x256xf32>
    %87 = vector.broadcast %86 : vector<1x256xf32> to vector<32x256xf32>
    %88 = arith.mulf %85, %87 : vector<32x256xf32>
    %89 = vector.extract_strided_slice %81 {offsets = [0, 0], sizes = [32, 1], strides = [1, 1]} : vector<32x9xf32> to vector<32x1xf32>
    %90 = vector.broadcast %89 : vector<32x1xf32> to vector<32x256xf32>
    %91 = arith.mulf %88, %90 : vector<32x256xf32>
    %92 = arith.addf %84, %91 : vector<32x256xf32>
    %c16_i32_14 = arith.constant 16 : i32
    %93 = tpu.dynamic_rotate %79 by %c16_i32_14 dim 1 : vector<32x256xf32>, i32 -> vector<32x256xf32>
    %94 = vector.extract_strided_slice %2 {offsets = [1, 0], sizes = [1, 256], strides = [1, 1]} : vector<9x256xf32> to vector<1x256xf32>
    %95 = vector.broadcast %94 : vector<1x256xf32> to vector<32x256xf32>
    %96 = arith.mulf %93, %95 : vector<32x256xf32>
    %97 = vector.extract_strided_slice %81 {offsets = [0, 1], sizes = [32, 1], strides = [1, 1]} : vector<32x9xf32> to vector<32x1xf32>
    %98 = vector.broadcast %97 : vector<32x1xf32> to vector<32x256xf32>
    %99 = arith.mulf %96, %98 : vector<32x256xf32>
    %100 = arith.addf %92, %99 : vector<32x256xf32>
    %c15_i32_15 = arith.constant 15 : i32
    %101 = tpu.dynamic_rotate %79 by %c15_i32_15 dim 1 : vector<32x256xf32>, i32 -> vector<32x256xf32>
    %102 = vector.extract_strided_slice %2 {offsets = [2, 0], sizes = [1, 256], strides = [1, 1]} : vector<9x256xf32> to vector<1x256xf32>
    %103 = vector.broadcast %102 : vector<1x256xf32> to vector<32x256xf32>
    %104 = arith.mulf %101, %103 : vector<32x256xf32>
    %105 = vector.extract_strided_slice %81 {offsets = [0, 2], sizes = [32, 1], strides = [1, 1]} : vector<32x9xf32> to vector<32x1xf32>
    %106 = vector.broadcast %105 : vector<32x1xf32> to vector<32x256xf32>
    %107 = arith.mulf %104, %106 : vector<32x256xf32>
    %108 = arith.addf %100, %107 : vector<32x256xf32>
    %c1_i32_16 = arith.constant 1 : i32
    %109 = tpu.dynamic_rotate %79 by %c1_i32_16 dim 1 : vector<32x256xf32>, i32 -> vector<32x256xf32>
    %110 = vector.extract_strided_slice %2 {offsets = [3, 0], sizes = [1, 256], strides = [1, 1]} : vector<9x256xf32> to vector<1x256xf32>
    %111 = vector.broadcast %110 : vector<1x256xf32> to vector<32x256xf32>
    %112 = arith.mulf %109, %111 : vector<32x256xf32>
    %113 = vector.extract_strided_slice %81 {offsets = [0, 3], sizes = [32, 1], strides = [1, 1]} : vector<32x9xf32> to vector<32x1xf32>
    %114 = vector.broadcast %113 : vector<32x1xf32> to vector<32x256xf32>
    %115 = arith.mulf %112, %114 : vector<32x256xf32>
    %116 = arith.addf %108, %115 : vector<32x256xf32>
    %c255_i32_17 = arith.constant 255 : i32
    %117 = tpu.dynamic_rotate %79 by %c255_i32_17 dim 1 : vector<32x256xf32>, i32 -> vector<32x256xf32>
    %118 = vector.extract_strided_slice %2 {offsets = [5, 0], sizes = [1, 256], strides = [1, 1]} : vector<9x256xf32> to vector<1x256xf32>
    %119 = vector.broadcast %118 : vector<1x256xf32> to vector<32x256xf32>
    %120 = arith.mulf %117, %119 : vector<32x256xf32>
    %121 = vector.extract_strided_slice %81 {offsets = [0, 5], sizes = [32, 1], strides = [1, 1]} : vector<32x9xf32> to vector<32x1xf32>
    %122 = vector.broadcast %121 : vector<32x1xf32> to vector<32x256xf32>
    %123 = arith.mulf %120, %122 : vector<32x256xf32>
    %124 = arith.addf %116, %123 : vector<32x256xf32>
    %c241_i32_18 = arith.constant 241 : i32
    %125 = tpu.dynamic_rotate %79 by %c241_i32_18 dim 1 : vector<32x256xf32>, i32 -> vector<32x256xf32>
    %126 = vector.extract_strided_slice %2 {offsets = [6, 0], sizes = [1, 256], strides = [1, 1]} : vector<9x256xf32> to vector<1x256xf32>
    %127 = vector.broadcast %126 : vector<1x256xf32> to vector<32x256xf32>
    %128 = arith.mulf %125, %127 : vector<32x256xf32>
    %129 = vector.extract_strided_slice %81 {offsets = [0, 6], sizes = [32, 1], strides = [1, 1]} : vector<32x9xf32> to vector<32x1xf32>
    %130 = vector.broadcast %129 : vector<32x1xf32> to vector<32x256xf32>
    %131 = arith.mulf %128, %130 : vector<32x256xf32>
    %132 = arith.addf %124, %131 : vector<32x256xf32>
    %c240_i32_19 = arith.constant 240 : i32
    %133 = tpu.dynamic_rotate %79 by %c240_i32_19 dim 1 : vector<32x256xf32>, i32 -> vector<32x256xf32>
    %134 = vector.extract_strided_slice %2 {offsets = [7, 0], sizes = [1, 256], strides = [1, 1]} : vector<9x256xf32> to vector<1x256xf32>
    %135 = vector.broadcast %134 : vector<1x256xf32> to vector<32x256xf32>
    %136 = arith.mulf %133, %135 : vector<32x256xf32>
    %137 = vector.extract_strided_slice %81 {offsets = [0, 7], sizes = [32, 1], strides = [1, 1]} : vector<32x9xf32> to vector<32x1xf32>
    %138 = vector.broadcast %137 : vector<32x1xf32> to vector<32x256xf32>
    %139 = arith.mulf %136, %138 : vector<32x256xf32>
    %140 = arith.addf %132, %139 : vector<32x256xf32>
    %c239_i32_20 = arith.constant 239 : i32
    %141 = tpu.dynamic_rotate %79 by %c239_i32_20 dim 1 : vector<32x256xf32>, i32 -> vector<32x256xf32>
    %142 = vector.extract_strided_slice %2 {offsets = [8, 0], sizes = [1, 256], strides = [1, 1]} : vector<9x256xf32> to vector<1x256xf32>
    %143 = vector.broadcast %142 : vector<1x256xf32> to vector<32x256xf32>
    %144 = arith.mulf %141, %143 : vector<32x256xf32>
    %145 = vector.extract_strided_slice %81 {offsets = [0, 8], sizes = [32, 1], strides = [1, 1]} : vector<32x9xf32> to vector<32x1xf32>
    %146 = vector.broadcast %145 : vector<32x1xf32> to vector<32x256xf32>
    %147 = arith.mulf %144, %146 : vector<32x256xf32>
    %148 = arith.addf %140, %147 : vector<32x256xf32>
    %c0_21 = arith.constant 0 : index
    %c0_22 = arith.constant 0 : index
    %149 = vector.load %arg8[%c0_21, %c0_22] : memref<32x6xf32, #tpu.memory_space<vmem>>, vector<32x1xf32>
    %c0_23 = arith.constant 0 : index
    %c1 = arith.constant 1 : index
    %150 = vector.load %arg8[%c0_23, %c1] : memref<32x6xf32, #tpu.memory_space<vmem>>, vector<32x1xf32>
    %c0_24 = arith.constant 0 : index
    %c2 = arith.constant 2 : index
    %151 = vector.load %arg8[%c0_24, %c2] : memref<32x6xf32, #tpu.memory_space<vmem>>, vector<32x2xf32>
    %c0_25 = arith.constant 0 : index
    %c4 = arith.constant 4 : index
    %152 = vector.load %arg8[%c0_25, %c4] : memref<32x6xf32, #tpu.memory_space<vmem>>, vector<32x2xf32>
    %c0_26 = arith.constant 0 : index
    %c0_27 = arith.constant 0 : index
    %153 = vector.load %arg7[%c0_26, %c0_27] : memref<32x32xf32, #tpu.memory_space<vmem>>, vector<32x32xf32>
    %cst_28 = arith.constant dense<0.000000e+00> : vector<32x256xf32>
    %154 = tpu.matmul %153, %148, %cst_28 {dimension_numbers = #tpu.dot_dimension_numbers<[1], [0], [0], [1], [0, 0, 1, 1], [], []>} : vector<32x32xf32>, vector<32x256xf32>, vector<32x256xf32> -> vector<32x256xf32>
    %155 = vector.broadcast %149 : vector<32x1xf32> to vector<32x256xf32>
    %156 = arith.addf %154, %155 : vector<32x256xf32>
    %cst_29 = arith.constant dense<0.000000e+00> : vector<32xf32>
    %157 = vector.multi_reduction <add>, %156, %cst_29 [1] : vector<32x256xf32> to vector<32xf32>
    %158 = vector.shape_cast %157 : vector<32xf32> to vector<32x1xf32>
    %cst_30 = arith.constant 2.560000e+02 : f32
    %159 = vector.broadcast %cst_30 : f32 to vector<32x1xf32>
    %160 = arith.divf %158, %159 : vector<32x1xf32>
    %161 = vector.broadcast %160 : vector<32x1xf32> to vector<32x2xf32>
    %162 = arith.mulf %151, %161 : vector<32x2xf32>
    %cst_31 = arith.constant dense<0.000000e+00> : vector<2xf32>
    %163 = vector.multi_reduction <add>, %162, %cst_31 [0] : vector<32x2xf32> to vector<2xf32>
    %164 = vector.shape_cast %163 : vector<2xf32> to vector<1x2xf32>
    %c0_32 = arith.constant 0 : index
    %c0_33 = arith.constant 0 : index
    %165 = vector.load %arg9[%c0_32, %c0_33] : memref<1x2xf32, #tpu.memory_space<vmem>>, vector<1x2xf32>
    %166 = arith.addf %164, %165 : vector<1x2xf32>
    %cst_34 = arith.constant 0.000000e+00 : f32
    %167 = vector.broadcast %cst_34 : f32 to vector<1x2xf32>
    %168 = arith.maximumf %166, %167 : vector<1x2xf32>
    %169 = vector.broadcast %168 : vector<1x2xf32> to vector<32x2xf32>
    %170 = arith.mulf %152, %169 : vector<32x2xf32>
    %cst_35 = arith.constant dense<0.000000e+00> : vector<32xf32>
    %171 = vector.multi_reduction <add>, %170, %cst_35 [1] : vector<32x2xf32> to vector<32xf32>
    %172 = vector.shape_cast %171 : vector<32xf32> to vector<32x1xf32>
    %173 = arith.addf %172, %150 : vector<32x1xf32>
    %cst_36 = arith.constant 0.000000e+00 : f32
    %174 = vector.broadcast %cst_36 : f32 to vector<32x1xf32>
    %175 = arith.subf %174, %173 : vector<32x1xf32>
    %176 = math.exp %175 : vector<32x1xf32>
    %cst_37 = arith.constant 1.000000e+00 : f32
    %177 = vector.broadcast %cst_37 : f32 to vector<32x1xf32>
    %178 = arith.addf %177, %176 : vector<32x1xf32>
    %cst_38 = arith.constant 1.000000e+00 : f32
    %179 = vector.broadcast %cst_38 : f32 to vector<32x1xf32>
    %180 = arith.divf %179, %178 : vector<32x1xf32>
    %181 = vector.broadcast %180 : vector<32x1xf32> to vector<32x256xf32>
    %182 = arith.mulf %156, %181 : vector<32x256xf32>
    %183 = arith.addf %182, %80 : vector<32x256xf32>
    %cst_39 = arith.constant 0.000000e+00 : f32
    %184 = vector.broadcast %cst_39 : f32 to vector<32x256xf32>
    %185 = arith.maximumf %183, %184 : vector<32x256xf32>
    %c0_40 = arith.constant 0 : index
    %c0_41 = arith.constant 0 : index
    %c0_42 = arith.constant 0 : index
    %186 = vector.load %arg10[%c0_40, %c0_41, %c0_42] : memref<1x32x256xf32, #tpu.memory_space<vmem>>, vector<1x32x256xf32>
    %187 = vector.shape_cast %186 : vector<1x32x256xf32> to vector<32x256xf32>
    %188 = vector.shape_cast %185 : vector<32x256xf32> to vector<1x32x256xf32>
    tpu.vector_store %arg10[%c0_40, %c0_41, %c0_42], %188 {strides = array<i32>} : memref<1x32x256xf32, #tpu.memory_space<vmem>>, vector<1x32x256xf32>,
    return
  }
  func.func @transform_0(%arg0: i32) -> (i32, i32, i32) {
    %c0_i32 = arith.constant 0 : i32
    %c0_i32_0 = arith.constant 0 : i32
    %c0_i32_1 = arith.constant 0 : i32
    return %arg0, %c0_i32, %c0_i32_0 : i32, i32, i32
  }
  func.func @transform_1(%arg0: i32) -> (i32, i32) {
    %c0_i32 = arith.constant 0 : i32
    %c0_i32_0 = arith.constant 0 : i32
    %c0_i32_1 = arith.constant 0 : i32
    return %c0_i32, %c0_i32_0 : i32, i32
  }
  func.func @transform_2(%arg0: i32) -> (i32, i32) {
    %c0_i32 = arith.constant 0 : i32
    %c0_i32_0 = arith.constant 0 : i32
    %c0_i32_1 = arith.constant 0 : i32
    return %c0_i32, %c0_i32_0 : i32, i32
  }
  func.func @transform_3(%arg0: i32) -> (i32, i32) {
    %c0_i32 = arith.constant 0 : i32
    %c0_i32_0 = arith.constant 0 : i32
    %c0_i32_1 = arith.constant 0 : i32
    return %c0_i32, %c0_i32_0 : i32, i32
  }
  func.func @transform_4(%arg0: i32) -> (i32, i32) {
    %c0_i32 = arith.constant 0 : i32
    %c0_i32_0 = arith.constant 0 : i32
    %c0_i32_1 = arith.constant 0 : i32
    return %c0_i32, %c0_i32_0 : i32, i32
  }
  func.func @transform_5(%arg0: i32) -> (i32, i32) {
    %c0_i32 = arith.constant 0 : i32
    %c0_i32_0 = arith.constant 0 : i32
    %c0_i32_1 = arith.constant 0 : i32
    return %c0_i32, %c0_i32_0 : i32, i32
  }
  func.func @transform_6(%arg0: i32) -> (i32, i32) {
    %c0_i32 = arith.constant 0 : i32
    %c0_i32_0 = arith.constant 0 : i32
    %c0_i32_1 = arith.constant 0 : i32
    return %c0_i32, %c0_i32_0 : i32, i32
  }
  func.func @transform_7(%arg0: i32) -> (i32, i32) {
    %c0_i32 = arith.constant 0 : i32
    %c0_i32_0 = arith.constant 0 : i32
    %c0_i32_1 = arith.constant 0 : i32
    return %c0_i32, %c0_i32_0 : i32, i32
  }
  func.func @transform_8(%arg0: i32) -> (i32, i32) {
    %c0_i32 = arith.constant 0 : i32
    %c0_i32_0 = arith.constant 0 : i32
    %c0_i32_1 = arith.constant 0 : i32
    return %c0_i32, %c0_i32_0 : i32, i32
  }
  func.func @transform_9(%arg0: i32) -> (i32, i32, i32) {
    %c0_i32 = arith.constant 0 : i32
    %c0_i32_0 = arith.constant 0 : i32
    %c0_i32_1 = arith.constant 0 : i32
    return %arg0, %c0_i32, %c0_i32_0 : i32, i32, i32
  }
}

</mosaic_0001>

<bundles_post_ra>
// kernel: tpu_custom_call.1
= control target key start
LH: loop header
LB: loop body
LE: loop exit
PB: predicated region body
PF: predicated region fallthrough
CT: control target
= control target key end

     0   :  { %14 = vsyncpa [#allocation3], 0  ;;  %s3507_s0 = inlined_call_operand.vmem [shape: f32[2,16,256], index: 0, kind: input, shape index: {}]   ;;  %s3508_s1 = inlined_call_operand.vmem [shape: f32[9,256], index: 1, kind: input, shape index: {}]   ;;  %s3509_s2 = inlined_call_operand.vmem [shape: f32[16,9], index: 2, kind: input, shape index: {}]   ;;  %s3510_s3 = inlined_call_operand.vmem [shape: f32[32,9], index: 3, kind: input, shape index: {}]   ;;  %s3511_s4 = inlined_call_operand.vmem [shape: f32[64,32], index: 4, kind: input, shape index: {}]   ;;  %s3512_s5 = inlined_call_operand.vmem [shape: f32[64,1], index: 5, kind: input, shape index: {}]   ;;  %s3513_s6 = inlined_call_operand.vmem [shape: f32[32,32], index: 6, kind: input, shape index: {}]   ;;  %s3514_s7 = inlined_call_operand.vmem [shape: f32[32,6], index: 7, kind: input, shape index: {}]   ;;  %s3515_s8 = inlined_call_operand.vmem [shape: f32[1,2], index: 8, kind: input, shape index: {}]   ;;  %s3516_s9 = inlined_call_operand.hbm [shape: f32[2,32,256], index: 9, kind: output, shape index: {}]  }
   0x1   :  { %16 = vsyncpa [#allocation3 + $0x1], 0  ;;  %s2113_s30 = smov 0   ;;  %s2115_s10 = smov 0  }
   0x2   :  { %s2117_s11 = smov 0   ;;  %s2119_s12 = smov 0  }
   0x3 LB: > { %s2134_s13 = sadd.s32 4294967295, %s2039_s12   ;;  %s1803_s14 = sadd.s32 4294967294, %s2039_s12   ;;  %s2039_s12 = sphi %s2119_s12, %s3687_s12   ;;  %s2035_s11 = sphi %s2117_s11, %s3686_s11   ;;  %s2031_s10 = sphi %s2115_s10, %s3685_s10   ;;  %s2027_s30 = sphi %s2113_s30, %s3684_s30  }
   0x4   : > { %s2138_s15 = sadd.s32 1, %s2039_s12   ;;  %s223_s16 = sadd.s32 1, %s2035_s11 }
   0x5   : > { %s220_s17 = ssub.s32 %s2039_s12, %s2138_s15  ;;  %p233_p0 = scmp.ne.s32.totalorder %s2035_s11, %s2031_s10 }
   0x6   : > { %p221_p1 = scmp.eq.s32.totalorder %s220_s17, 0  ;;  %p234_p2 = scmp.eq.s32.totalorder %s2134_s13, 1 }
   0x7   : > { %p239_p3 = scmp.ne.s32.totalorder %s2031_s10, %s2027_s30  ;;  %p240_p4 = scmp.eq.s32.totalorder %s1803_s14, 1 }
   0x8   : > { %s2149_s18 = scalar_select %p221_p1, %s2035_s11, %s223_s16  }
   0x9   : > { %p2151_p5 = por %p234_p2, %p233_p0  ;;  %p2155_p6 = por %p240_p4, %p239_p3 }
   0xa   : > { %p1806_p7 = scmp.ge.s32.totalorder %s2039_s12, 1  ;;  %p290_p8 = scmp.lt.s32.totalorder %s2039_s12, 3 }
   0xc   : > { %p291_p9 = pnand %p1806_p7, %p290_p8 }
   0xe   : > { %294 = sbr.rel (%p291_p9) target bundleno = 1728 (0x6c0), region = 56 }
  0x15   : > { %v2164_v0 = vld [vmem:[%s3509_s2] sm:$0xff]  ;;  %p326_p10 = scmp.lt.s32.totalorder %s2134_s13, 1  ;;  %v3529_v1 = vmov 0   ;;  %v2042_v2 = vmov 4   ;;  %v2175_v3 = vld [vmem:[%s3509_s2 + $0x8] sm:$0xff]  ;;  %v3523_v4 = vmov 1   ;;  %v363_v54 = vlaneseq }
  0x16   : > { %1913 = vset.pattern.permute.xlu1 %v3529_v1  ;;  %1912 = vset.pattern.permute.xlu0 %v2042_v2  ;;  %s2044_s14 = smov 17   ;;  %v2045_v9 = vmov 2   ;;  %s2046_s16 = smov 16   ;;  %v3534_v10 = vmov 3   ;;  %v3535_v11 = vmov 5   ;;  %v3532_v12 = vmov 6  }
  0x17   : > { %383 = vperm.xlu1 %1913, %v2164_v0   ;;  %343 = vperm.xlu0 %1912, %v2164_v0   ;;  %s327_s23 = scalar_select %p326_p10, %s2134_s13, 1  ;;  %v3530_v13 = vmov 7   ;;  %v3527_v14 = vmov 8   ;;  %v3525_v15 = vmov 0.0   ;;  %v2301_v22 = vld [vmem:[%s3510_s3] sm:$0xff]  ;;  %v2314_v26 = vld [vmem:[%s3510_s3 + $0x10] sm:$0xff] }
  0x18   : > { %s2048_s17 = smov 15   ;;  %s2050_s21 = smov 1   ;;  %830 = vmatprep.mubr.f32.mxu0 %v3525_v15  ;;  %866 = vmatprep.mubr.f32.mxu1 %v3525_v15  ;;  %v693_v23 = vld [vmem:[%s3512_s5] sm:$0xff]  ;;  %3589 = vst [vmem:[#allocation6_spill] sm:$0xff] %v2314_v26  ;;  %v695_v27 = vld [vmem:[%s3512_s5 + $0x10] sm:$0xff]  ;;  %v696_v30 = vld [vmem:[%s3512_s5 + $0x18] sm:$0xff] }
  0x19   : > { %s1830_s26 = sshll.u32 %s327_s23, 5  ;;  %s3521_s22 = smov 127   ;;  %v2342_v35 = vld [vmem:[%s3510_s3 + $0x8] sm:$0xff]  ;;  %v2380_v46 = vld [vmem:[%s3510_s3 + $0x18] sm:$0xff]  ;;  %v2416_v57 = vshrl.u32 %v363_v54, 7  ;;  %v2419_v58 = vand.u32 127, %v363_v54 }
  0x1a   : > { %s330_s29 = scalar_lea.vmem %s3507_s0, %s1830_s26  ;;  %s3519_s23 = smov 113   ;;  %v335_v61 = vld [vmem:[%s3508_s1] sm:$0xff]  ;;  %v336_v63 = vld [vmem:[%s3508_s1 + $0x8] sm:$0xff]  ;;  %vm741_vm8 = vcmask 261120   ;;  %vm1581_vm9 = vcmask 31760   ;;  %vm1634_vm10 = vcmask 15360  }
  0x1b   : > { %387 = vperm.xlu1 %1913, %v2175_v3   ;;  %348 = vperm.xlu0 %1912, %v2175_v3   ;;  %v2186_v5 = vld [vmem:[%s330_s29 + $0x10] sm:$0xff]  ;;  %v2188_v6 = vld [vmem:[%s330_s29] sm:$0xff]  ;;  %v2194_v7 = vld [vmem:[%s330_s29 + $0x18] sm:$0xff]  ;;  %s3517_s24 = smov 112   ;;  %s2057_s25 = smov 111   ;;  %v2426_v60 = vsub.s32 0, %v2416_v57 }
  0x1c   : > { %3588 = vst [vmem:[#allocation5_spill] sm:$0xff] %v2186_v5  ;;  %v2196_v8 = vld [vmem:[%s330_s29 + $0x8] sm:$0xff]  ;;  %vm365_vm0 = vcmp.lt.s32.totalorder %v2419_v58, 17  ;;  %v536_v54 = vsub.s32 5, %v2416_v57  ;;  %vm406_vm1 = vcmp.lt.s32.totalorder %v2419_v58, 16  ;;  %vm447_vm2 = vcmp.lt.s32.totalorder %v2419_v58, 15 }
  0x1d   : > { %3593 = vst [vmem:[#allocation10_spill] sm:$0xff] %v2426_v60  ;;  %vm488_vm3 = vcmp.lt.s32.totalorder %v2419_v58, 1  ;;  %vm529_vm4 = vcmp.lt.s32.totalorder %v2419_v58, 127  ;;  %vm570_vm5 = vcmp.lt.s32.totalorder %v2419_v58, 113  ;;  %vm611_vm6 = vcmp.lt.s32.totalorder %v2419_v58, 112  ;;  %s3628_s29 = smov 112  }
  0x1e   : > { %vm652_vm7 = vcmp.lt.s32.totalorder %v2419_v58, 111  ;;  %s323_s27 = sand.u32 1, %s2031_s10   ;;  %s2061_s26 = smov [#allocation2]  }
  0x1f   : > { %1915 = vset.pattern.permute.xlu1 %v3523_v4  ;;  %1914 = vset.pattern.permute.xlu0 %v3523_v4 }
  0x20   : > { %428 = vperm.xlu1 %1915, %v2175_v3   ;;  %424 = vperm.xlu0 %1914, %v2164_v0  }
  0x24   : > { %357 = vrot.lane.b32.xlu0 %v2186_v5, %s2044_s14  ;;  %355 = vrot.lane.b32.xlu1 %v2188_v6, %s2044_s14 }
  0x25   : > { %1916 = vset.pattern.permute.xlu1 %v2045_v9  ;;  %1917 = vset.pattern.permute.xlu0 %v2045_v9 }
  0x28   : > { %361 = vrot.lane.b32.xlu0 %v2194_v7, %s2044_s14  ;;  %359 = vrot.lane.b32.xlu1 %v2196_v8, %s2044_s14 }
  0x2c   : > { %469 = vperm.xlu0 %1917, %v2175_v3   ;;  %465 = vperm.xlu1 %1916, %v2164_v0  }
  0x30   : > { %402 = vrot.lane.b32.xlu0 %v2196_v8, %s2046_s16  ;;  %398 = vrot.lane.b32.xlu1 %v2188_v6, %s2046_s16 }
  0x31   : > { %1918 = vset.pattern.permute.xlu0 %v3534_v10  ;;  %1919 = vset.pattern.permute.xlu1 %v3534_v10 }
  0x34   : > { %506 = vperm.xlu0 %1918, %v2164_v0   ;;  %400 = vrot.lane.b32.xlu1 %v2186_v5, %s2046_s16 }
  0x38   : > { %404 = vrot.lane.b32.xlu1 %v2194_v7, %s2046_s16  ;;  %441 = vrot.lane.b32.xlu0 %v2186_v5, %s2048_s17 }
  0x39   : > { %1921 = vset.pattern.permute.xlu0 %v3535_v11 }
  0x3c   : > { %510 = vperm.xlu1 %1919, %v2175_v3   ;;  %445 = vrot.lane.b32.xlu0 %v2194_v7, %s2048_s17 }
  0x40   : > { %439 = vrot.lane.b32.xlu1 %v2188_v6, %s2048_s17  ;;  %551 = vperm.xlu0 %1921, %v2175_v3  }
  0x41   : > { %1920 = vset.pattern.permute.xlu1 %v3535_v11 }
  0x44   : > { %443 = vrot.lane.b32.xlu1 %v2196_v8, %s2048_s17  ;;  %484 = vrot.lane.b32.xlu0 %v2196_v8, %s2050_s21 }
  0x45   : > { %1922 = vset.pattern.permute.xlu0 %v3532_v12 }
  0x48   : > { %547 = vperm.xlu1 %1920, %v2164_v0   ;;  %588 = vperm.xlu0 %1922, %v2164_v0  }
  0x4c   : > { %480 = vrot.lane.b32.xlu1 %v2188_v6, %s2050_s21  ;;  %523 = vrot.lane.b32.xlu0 %v2186_v5, %s3521_s22 }
  0x4d   : > { %1923 = vset.pattern.permute.xlu1 %v3532_v12  ;;  %1925 = vset.pattern.permute.xlu0 %v3530_v13 }
  0x50   : > { %482 = vrot.lane.b32.xlu1 %v2186_v5, %s2050_s21  ;;  %527 = vrot.lane.b32.xlu0 %v2194_v7, %s3521_s22 }
  0x54   : > { %486 = vrot.lane.b32.xlu1 %v2194_v7, %s2050_s21  ;;  %633 = vperm.xlu0 %1925, %v2175_v3  }
  0x58   : > { %592 = vperm.xlu1 %1923, %v2175_v3   ;;  %566 = vrot.lane.b32.xlu0 %v2196_v8, %s3519_s23 }
  0x59   : > { %1926 = vset.pattern.permute.xlu0 %v3527_v14 }
  0x5c   : > { %521 = vrot.lane.b32.xlu1 %v2188_v6, %s3521_s22  ;;  %670 = vperm.xlu0 %1926, %v2164_v0  }
  0x5d   : > { %1924 = vset.pattern.permute.xlu1 %v3530_v13 }
  0x60   : > { %525 = vrot.lane.b32.xlu1 %v2196_v8, %s3521_s22  ;;  %605 = vrot.lane.b32.xlu0 %v2186_v5, %s3517_s24 }
  0x61   : > { %1929 = vset.pattern.permute.xlu0 %v2042_v2 }
  0x64   : > { %629 = vperm.xlu1 %1924, %v2164_v0   ;;  %609 = vrot.lane.b32.xlu0 %v2194_v7, %s3517_s24  ;;  %v413_v0 = vsub.s32 1, %v2416_v57 }
  0x68   : > { %562 = vrot.lane.b32.xlu1 %v2188_v6, %s3519_s23  ;;  %646 = vrot.lane.b32.xlu0 %v2186_v5, %s2057_s25 }
  0x69   : > { %1927 = vset.pattern.permute.xlu1 %v3527_v14 }
  0x6c   : > { %564 = vrot.lane.b32.xlu1 %v2186_v5, %s3519_s23  ;;  %650 = vrot.lane.b32.xlu0 %v2194_v7, %s2057_s25 }
  0x70   : > { %568 = vrot.lane.b32.xlu1 %v2194_v7, %s3519_s23  ;;  %893 = vperm.xlu0 %1929, %v2301_v22   ;;  %s3626_s23 = smov 127  }
  0x74   : > { %674 = vperm.xlu1 %1927, %v2175_v3   ;;  %903 = vperm.xlu0 %1929, %v2314_v26   ;;  %v694_v3 = vld [vmem:[%s3512_s5 + $0x8] sm:$0xff] }
  0x78   : > { %603 = vrot.lane.b32.xlu1 %v2188_v6, %s3517_s24  ;;  %1936 = vset.pattern.permute.xlu0 %v3523_v4 }
  0x79   : > { %1928 = vset.pattern.permute.xlu1 %v3529_v1  ;;  %1024 = vperm.xlu0 %1936, %v2314_v26  }
  0x7c   : > { %607 = vrot.lane.b32.xlu1 %v2196_v8, %s3517_s24  ;;  %s3627_s24 = smov 113  }
  0x7d   : > { %1939 = vset.pattern.permute.xlu0 %v2045_v9 }
  0x7e   : > { %1088 = vperm.xlu0 %1939, %v2314_v26  }
  0x80   : > { %644 = vrot.lane.b32.xlu1 %v2188_v6, %s2057_s25 }
  0x82   : > { %1940 = vset.pattern.permute.xlu0 %v3534_v10 }
  0x83   : > { %1148 = vperm.xlu0 %1940, %v2342_v35  }
  0x84   : > { %648 = vrot.lane.b32.xlu1 %v2196_v8, %s2057_s25 }
  0x87   : > { %1152 = vperm.xlu0 %1940, %v2314_v26  }
  0x88   : > { %703 = vperm.xlu1 %1928, %v693_v23   ;;  %v454_v23 = vsub.s32 2, %v2416_v57 }
  0x8b   : > { %1943 = vset.pattern.permute.xlu0 %v3535_v11  ;;  %v2475_v11 = vrot.slane %v336_v63, %v454_v23 }
  0x8c   : > { %713 = vperm.xlu1 %1928, %v695_v27   ;;  %1212 = vperm.xlu0 %1943, %v2342_v35   ;;  %v495_v27 = vsub.s32 3, %v2416_v57 }
  0x90   : > { %718 = vperm.xlu1 %1928, %v696_v30   ;;  %1216 = vperm.xlu0 %1943, %v2314_v26   ;;  %v2448_v30 = vrot.slane %v335_v61, %v2426_v60 }
  0x92   : > { %3594 = vst [vmem:[#allocation11_spill] sm:$0xff] %v2448_v30 }
  0x94   : > { %1930 = vset.pattern.permute.xlu1 %v2042_v2  ;;  %1946 = vset.pattern.permute.xlu0 %v3532_v12  ;;  %v577_v12 = vsub.s32 6, %v2416_v57 }
  0x95   : > { %898 = vperm.xlu1 %1930, %v2342_v35   ;;  %1276 = vperm.xlu0 %1946, %v2342_v35  }
  0x96   : > { %v2286_v16 = vpop.permute.xlu1 %383  ;;  %v2288_v17 = vpop.permute.xlu0 %343 }
  0x99   : > { %1931 = vset.pattern.permute.xlu1 %v3529_v1  ;;  %1280 = vperm.xlu0 %1946, %v2314_v26  }
  0x9a   : > { %v2290_v18 = vpop.permute.xlu1 %387  ;;  %v2292_v19 = vpop.permute.xlu0 %348  ;;  %952 = vperm.xlu1 %1931, %v2301_v22  }
  0x9d   : > { %1949 = vset.pattern.permute.xlu0 %v3530_v13 }
  0x9e   : > { %1932 = vset.pattern.permute.xlu1 %v3523_v4  ;;  %1340 = vperm.xlu0 %1949, %v2342_v35  }
  0x9f   : > { %v2294_v20 = vpop.permute.xlu1 %428  ;;  %v2296_v21 = vpop.permute.xlu0 %424  ;;  %1016 = vperm.xlu1 %1932, %v2301_v22  }
  0xa2   : > { %1344 = vperm.xlu0 %1949, %v2314_v26  }
  0xa3   : > { %v2307_v24 = vpop.permute.xlu0 %357  ;;  %v2309_v25 = vpop.permute.xlu1 %355  ;;  %1020 = vperm.xlu1 %1932, %v2342_v35  }
  0xa6   : > { %1952 = vset.pattern.permute.xlu0 %v3527_v14  ;;  %v2465_v14 = vrot.slane %v335_v61, %v413_v0 }
  0xa7   : > { %v2320_v28 = vpop.permute.xlu0 %361  ;;  %v2322_v29 = vpop.permute.xlu1 %359  ;;  %1933 = vset.pattern.permute.xlu1 %v2042_v2  ;;  %1404 = vperm.xlu0 %1952, %v2342_v35  }
  0xa8   : > { %908 = vperm.xlu1 %1933, %v2380_v46   ;;  %v369_v15 = vsel %vm365_vm0, %v2320_v28, %v2307_v24 }
  0xab   : > { %v2328_v31 = vpop.permute.xlu0 %469  ;;  %v2330_v32 = vpop.permute.xlu1 %465  ;;  %1412 = vperm.xlu0 %1952, %v2380_v46  }
  0xac   : > { %1934 = vset.pattern.permute.xlu1 %v3529_v1 }
  0xad   : > { %960 = vperm.xlu1 %1934, %v2314_v26   ;;  %v2488_v26 = vrot.slane %v335_v61, %v536_v54 }
  0xaf   : > { %v2333_v33 = vpop.permute.xlu0 %402  ;;  %v2335_v34 = vpop.permute.xlu1 %398  ;;  %1955 = vset.pattern.permute.xlu0 %v3529_v1  ;;  %v2467_v1 = vrot.slane %v336_v63, %v413_v0  ;;  %v2486_v0 = vrot.slane %v336_v63, %v495_v27 }
  0xb0   : > { %708 = vperm.xlu0 %1955, %v694_v3   ;;  %v2477_v3 = vrot.slane %v335_v61, %v495_v27  ;;  %v353_v27 = vmul.f32 %v2292_v19, %v2186_v5 }
  0xb1   : > { %1935 = vset.pattern.permute.xlu1 %v2045_v9  ;;  %3596 = vst [vmem:[#allocation13_spill] sm:$0xff] %v2467_v1 }
  0xb2   : > { %1080 = vperm.xlu1 %1935, %v2301_v22  }
  0xb3   : > { %v2346_v36 = vpop.permute.xlu0 %506  ;;  %v2348_v37 = vpop.permute.xlu1 %400 }
  0xb4   : > { %956 = vperm.xlu0 %1955, %v2342_v35  }
  0xb6   : > { %1084 = vperm.xlu1 %1935, %v2342_v35  }
  0xb7   : > { %v2354_v38 = vpop.permute.xlu0 %441  ;;  %v2356_v39 = vpop.permute.xlu1 %404 }
  0xb8   : > { %v408_v35 = vsel %vm406_vm1, %v2348_v37, %v2356_v39  ;;  %964 = vperm.xlu0 %1955, %v2380_v46  }
  0xba   : > { %1937 = vset.pattern.permute.xlu1 %v3523_v4  ;;  %v2454_v4 = vrot.slane %v336_v63, %v2426_v60 }
  0xbb   : > { %v2360_v40 = vpop.permute.xlu0 %445  ;;  %v2362_v41 = vpop.permute.xlu1 %510  ;;  %1028 = vperm.xlu1 %1937, %v2380_v46  }
  0xbc   : > { %3595 = vst [vmem:[#allocation12_spill] sm:$0xff] %v2454_v4 }
  0xbf   : > { %v2367_v42 = vpop.permute.xlu1 %439  ;;  %v2369_v43 = vpop.permute.xlu0 %551  ;;  %1938 = vset.pattern.permute.xlu1 %v3534_v10  ;;  %v2473_v10 = vrot.slane %v335_v61, %v454_v23 }
  0xc0   : > { %1144 = vperm.xlu1 %1938, %v2301_v22  }
  0xc3   : > { %v2373_v44 = vpop.permute.xlu1 %443  ;;  %v2375_v45 = vpop.permute.xlu0 %484 }
  0xc4   : > { %1941 = vset.pattern.permute.xlu1 %v2045_v9  ;;  %v367_v9 = vsel %vm365_vm0, %v2307_v24, %v2320_v28  ;;  %v380_v24 = vmul.f32 %v2448_v30, %v369_v15  ;;  %v368_v28 = vsel %vm365_vm0, %v2322_v29, %v2309_v25  ;;  %v2497_v15 = vrot.slane %v336_v63, %v536_v54 }
  0xc5   : > { %1092 = vperm.xlu1 %1941, %v2380_v46   ;;  %v381_v23 = vmul.f32 %v2454_v4, %v367_v9 }
  0xc6   : > { %v392_v54 = vmul.f32 %v2290_v18, %v380_v24  ;;  %v3600_v24 = vmov 3  }
  0xc7   : > { %v2385_v47 = vpop.permute.xlu1 %547  ;;  %v2387_v48 = vpop.permute.xlu0 %588 }
  0xc8   : > { %3590 = vst [vmem:[#allocation7_spill] sm:$0xff] %v2385_v47  ;;  %3591 = vst [vmem:[#allocation8_spill] sm:$0xff] %v2387_v48  ;;  %v2505_v48 = vrot.slane %v336_v63, %v577_v12  ;;  %v618_v47 = vsub.s32 7, %v2416_v57  ;;  %v409_v57 = vsel %vm406_vm1, %v2333_v33, %v2335_v34 }
  0xcb   : > { %v2392_v49 = vpop.permute.xlu1 %480  ;;  %v2395_v50 = vpop.permute.xlu0 %523 }
  0xcf   : > { %v2399_v51 = vpop.permute.xlu1 %482  ;;  %v2403_v52 = vpop.permute.xlu0 %527 }
  0xd3   : > { %v2406_v53 = vpop.permute.xlu1 %486  ;;  %v2413_v56 = vpop.permute.xlu0 %633 }
  0xd4   : > { %3592 = vst [vmem:[#allocation9_spill] sm:$0xff] %v2413_v56  ;;  %v2503_v56 = vrot.slane %v335_v61, %v577_v12  ;;  %v410_v12 = vsel %vm406_vm1, %v2356_v39, %v2348_v37  ;;  %v449_v37 = vsel %vm447_vm2, %v2354_v38, %v2360_v40  ;;  %v451_v39 = vsel %vm447_vm2, %v2360_v40, %v2354_v38 }
  0xd5   : > { %v351_v38 = vmul.f32 %v2288_v17, %v2188_v6  ;;  %v352_v40 = vmul.f32 %v2288_v17, %v2196_v8  ;;  %v396_v17 = vadd.f32 %v392_v54, %v353_v27  ;;  %v3602_v27 = vmov 6  }
  0xd7   : > { %v2410_v55 = vpop.permute.xlu1 %592  ;;  %v2432_v62 = vpop.permute.xlu0 %566 }
  0xdb   : > { %v2421_v59 = vpop.permute.xlu1 %521  ;;  %v2479_v60 = vpop.permute.xlu0 %670 }
  0xdc   : > { %3598 = vst [vmem:[#allocation15_spill] sm:$0xff] %v2479_v60  ;;  %v366_v60 = vsel %vm365_vm0, %v2309_v25, %v2322_v29  ;;  %v354_v25 = vmul.f32 %v2292_v19, %v2194_v7  ;;  %v378_v29 = vmul.f32 %v2448_v30, %v368_v28  ;;  %v407_v19 = vsel %vm406_vm1, %v2335_v34, %v2333_v33 }
  0xdd   : > { %v379_v5 = vmul.f32 %v2454_v4, %v366_v60  ;;  %v393_v28 = vmul.f32 %v2290_v18, %v381_v23  ;;  %v421_v18 = vmul.f32 %v2465_v14, %v410_v12  ;;  %v422_v33 = vmul.f32 %v2467_v1, %v408_v35 }
  0xde   : > { %v2547_v34 = vrot.slane %v335_v61, %v618_v47  ;;  %v2549_v23 = vrot.slane %v336_v63, %v618_v47  ;;  %v419_v30 = vmul.f32 %v2465_v14, %v409_v57  ;;  %v462_v12 = vmul.f32 %v2473_v10, %v451_v39 }
  0xdf   : > { %v2439_v2 = vpop.permute.xlu1 %525  ;;  %v2541_v60 = vpop.permute.xlu0 %605  ;;  %v463_v61 = vmul.f32 %v2475_v11, %v449_v37  ;;  %v490_v47 = vsel %vm488_vm3, %v2399_v51, %v2406_v53  ;;  %v492_v63 = vsel %vm488_vm3, %v2406_v53, %v2399_v51  ;;  %v397_v35 = vadd.f32 %v393_v28, %v354_v25 }
  0xe0   : > { %3601 = vst [vmem:[#allocation16_spill] sm:$0xff] %v2549_v23  ;;  %v391_v57 = vmul.f32 %v2286_v16, %v379_v5  ;;  %v433_v37 = vmul.f32 %v2294_v20, %v421_v18  ;;  %v434_v39 = vmul.f32 %v2294_v20, %v422_v33  ;;  %v450_v51 = vsel %vm447_vm2, %v2373_v44, %v2367_v42 }
  0xe1   : > { %v431_v25 = vmul.f32 %v2296_v21, %v419_v30  ;;  %v504_v20 = vmul.f32 %v2486_v0, %v490_v47  ;;  %v474_v54 = vmul.f32 %v2328_v31, %v462_v12  ;;  %v460_v18 = vmul.f32 %v2473_v10, %v450_v51 }
  0xe2   : > { %v395_v28 = vadd.f32 %v391_v57, %v352_v40  ;;  %v438_v12 = vadd.f32 %v434_v39, %v397_v35  ;;  %v530_v39 = vsel %vm529_vm4, %v2421_v59, %v2439_v2 }
  0xe3   : > { %v2469_v13 = vpop.permute.xlu1 %629 }
  0xe4   : > { %3597 = vst [vmem:[#allocation14_spill] sm:$0xff] %v2469_v13  ;;  %v3599_v13 = vmov 5  }
  0xe5   : > { %1942 = vset.pattern.permute.xlu1 %v3599_v13 }
  0xe6   : > { %1208 = vperm.xlu1 %1942, %v2301_v22  }
  0xe7   : > { %v2507_v9 = vpop.permute.xlu1 %562 }
  0xea   : > { %1944 = vset.pattern.permute.xlu1 %v3600_v24  ;;  %v420_v24 = vmul.f32 %v2467_v1, %v407_v19  ;;  %v390_v19 = vmul.f32 %v2286_v16, %v378_v29  ;;  %v448_v1 = vsel %vm447_vm2, %v2367_v42, %v2373_v44  ;;  %v503_v16 = vmul.f32 %v2477_v3, %v492_v63  ;;  %v610_v29 = vpop.permute.xlu0 %609 }
  0xeb   : > { %v565_v4 = vpop.permute.xlu1 %564  ;;  %1156 = vperm.xlu1 %1944, %v2380_v46   ;;  %v475_v42 = vmul.f32 %v2328_v31, %v463_v61  ;;  %v531_v44 = vsel %vm529_vm4, %v2395_v50, %v2403_v52  ;;  %v461_v33 = vmul.f32 %v2475_v11, %v448_v1  ;;  %v489_v31 = vsel %vm488_vm3, %v2392_v49, %v2375_v45 }
  0xec   : > { %v432_v5 = vmul.f32 %v2296_v21, %v420_v24  ;;  %v533_v21 = vsel %vm529_vm4, %v2403_v52, %v2395_v50  ;;  %v394_v30 = vadd.f32 %v390_v19, %v351_v38  ;;  %v437_v24 = vadd.f32 %v433_v37, %v396_v17 }
  0xed   : > { %v491_v61 = vsel %vm488_vm3, %v2375_v45, %v2392_v49  ;;  %v515_v50 = vmul.f32 %v2362_v41, %v503_v16  ;;  %v516_v52 = vmul.f32 %v2362_v41, %v504_v20  ;;  %v544_v1 = vmul.f32 %v2488_v26, %v531_v44 }
  0xee   : > { %v545_v38 = vmul.f32 %v2497_v15, %v533_v21  ;;  %v435_v40 = vadd.f32 %v431_v25, %v394_v30  ;;  %v436_v63 = vadd.f32 %v432_v5, %v395_v28  ;;  %v478_v17 = vadd.f32 %v474_v54, %v437_v24  ;;  %v647_v19 = vpop.permute.xlu0 %646 }
  0xef   : > { %v569_v53 = vpop.permute.xlu1 %568  ;;  %1945 = vset.pattern.permute.xlu1 %v3602_v27  ;;  %v479_v35 = vadd.f32 %v475_v42, %v438_v12  ;;  %v472_v45 = vmul.f32 %v2330_v32, %v460_v18  ;;  %v473_v49 = vmul.f32 %v2330_v32, %v461_v33  ;;  %v501_v37 = vmul.f32 %v2477_v3, %v491_v61 }
  0xf0   : > { %1272 = vperm.xlu1 %1945, %v2301_v22   ;;  %v572_v41 = vsel %vm570_vm5, %v565_v4, %v569_v53  ;;  %v574_v57 = vsel %vm570_vm5, %v569_v53, %v565_v4  ;;  %v532_v32 = vsel %vm529_vm4, %v2439_v2, %v2421_v59  ;;  %v519_v25 = vadd.f32 %v515_v50, %v478_v17  ;;  %v2673_v17 = vld [vmem:[%s3508_s1 + $0x10] ss:$0 sm:$0xff] }
  0xf1   : > { %v520_v5 = vadd.f32 %v516_v52, %v479_v35  ;;  %v556_v16 = vmul.f32 %v2369_v43, %v544_v1  ;;  %v557_v4 = vmul.f32 %v2369_v43, %v545_v38  ;;  %v571_v53 = vsel %vm570_vm5, %v2507_v9, %v2432_v62  ;;  %v3604_v38 = vld [vmem:[#allocation7_spill] sm:$0xff]  ;;  %v2678_v35 = vld [vmem:[%s3508_s1 + $0x18] ss:$0 sm:$0xff] }
  0xf2   : > { %v573_v20 = vsel %vm570_vm5, %v2432_v62, %v2507_v9  ;;  %v585_v54 = vmul.f32 %v2503_v56, %v572_v41  ;;  %v586_v59 = vmul.f32 %v2505_v48, %v574_v57  ;;  %v3603_v2 = vmov 7   ;;  %v651_v12 = vpop.permute.xlu0 %650 }
  0xf3   : > { %v2608_v47 = vpop.permute.xlu1 %674  ;;  %v476_v42 = vadd.f32 %v472_v45, %v435_v40  ;;  %v477_v44 = vadd.f32 %v473_v49, %v436_v63  ;;  %v542_v43 = vmul.f32 %v2488_v26, %v530_v39  ;;  %v543_v21 = vmul.f32 %v2497_v15, %v532_v32 }
  0xf4   : > { %1947 = vset.pattern.permute.xlu1 %v3599_v13  ;;  %v502_v13 = vmul.f32 %v2486_v0, %v489_v31  ;;  %v513_v30 = vmul.f32 %v2346_v36, %v501_v37  ;;  %v613_v62 = vsel %vm611_vm6, %v2541_v60, %v610_v29  ;;  %v615_v9 = vsel %vm611_vm6, %v610_v29, %v2541_v60 }
  0xf5   : > { %1220 = vperm.xlu1 %1947, %v2380_v46   ;;  %v583_v33 = vmul.f32 %v2503_v56, %v571_v53  ;;  %v584_v24 = vmul.f32 %v2505_v48, %v573_v20  ;;  %v560_v61 = vadd.f32 %v556_v16, %v519_v25  ;;  %v561_v50 = vadd.f32 %v557_v4, %v520_v5  ;;  %v3606_v53 = vld [vmem:[#allocation9_spill] sm:$0xff] }
  0xf6   : > { %v514_v28 = vmul.f32 %v2346_v36, %v502_v13  ;;  %v597_v52 = vmul.f32 %v2410_v55, %v585_v54  ;;  %v598_v1 = vmul.f32 %v2410_v55, %v586_v59  ;;  %v554_v60 = vmul.f32 %v3604_v38, %v542_v43  ;;  %v3605_v13 = vld [vmem:[#allocation8_spill] sm:$0xff]  ;;  %v3607_v59 = vld [vmem:[#allocation14_spill] sm:$0xff] }
  0xf7   : > { %v604_v51 = vpop.permute.xlu1 %603  ;;  %v555_v29 = vmul.f32 %v3604_v38, %v543_v21  ;;  %v626_v40 = vmul.f32 %v2547_v34, %v613_v62  ;;  %v627_v63 = vmul.f32 %v2549_v23, %v615_v9  ;;  %v654_v55 = vsel %vm652_vm7, %v647_v19, %v651_v12 }
  0xf8   : > { %v656_v45 = vsel %vm652_vm7, %v651_v12, %v647_v19  ;;  %v517_v57 = vadd.f32 %v513_v30, %v476_v42  ;;  %v518_v37 = vadd.f32 %v514_v28, %v477_v44  ;;  %v595_v39 = vmul.f32 %v3605_v13, %v583_v33 }
  0xf9   : > { %1948 = vset.pattern.permute.xlu1 %v3603_v2  ;;  %v596_v32 = vmul.f32 %v3605_v13, %v584_v24  ;;  %v601_v25 = vadd.f32 %v597_v52, %v560_v61  ;;  %v667_v4 = vmul.f32 %v2673_v17, %v654_v55  ;;  %v668_v19 = vmul.f32 %v2678_v35, %v656_v45 }
  0xfa   : > { %1336 = vperm.xlu1 %1948, %v2301_v22   ;;  %v558_v5 = vadd.f32 %v554_v60, %v517_v57  ;;  %v559_v16 = vadd.f32 %v555_v29, %v518_v37  ;;  %v638_v20 = vmul.f32 %v3606_v53, %v626_v40  ;;  %v639_v54 = vmul.f32 %v3606_v53, %v627_v63  ;;  %v2736_v57 = vpop.permute.xlu0 %893 }
  0xfb   : > { %v608_v18 = vpop.permute.xlu1 %607  ;;  %v3608_v21 = vmov 8   ;;  %v1836_v45 = vpack.c.bf16 %v2194_v7, %v2196_v8  ;;  %v3612_v7 = vmov 0   ;;  %v3613_v8 = vmov 0.0  }
  0xfc   : > { %v612_v31 = vsel %vm611_vm6, %v604_v51, %v608_v18  ;;  %v614_v36 = vsel %vm611_vm6, %v608_v18, %v604_v51  ;;  %v602_v51 = vadd.f32 %v598_v1, %v561_v50  ;;  %v600_v62 = vadd.f32 %v596_v32, %v559_v16  ;;  %v3609_v50 = vld [vmem:[#allocation15_spill] sm:$0xff] }
  0xfd   : > { %v624_v49 = vmul.f32 %v2547_v34, %v612_v31  ;;  %v599_v9 = vadd.f32 %v595_v39, %v558_v5  ;;  %v642_v12 = vadd.f32 %v638_v20, %v601_v25  ;;  %v679_v31 = vmul.f32 %v2608_v47, %v667_v4 }
  0xfe   : > { %1950 = vset.pattern.permute.xlu1 %v3602_v27  ;;  %v625_v27 = vmul.f32 %v2549_v23, %v614_v36  ;;  %v643_v24 = vadd.f32 %v639_v54, %v602_v51  ;;  %v680_v36 = vmul.f32 %v2608_v47, %v668_v19  ;;  %v3610_v47 = vld [vmem:[#allocation5_spill] sm:$0xff]  ;;  %v2738_v37 = vpop.permute.xlu0 %903 }
  0xff   : > { %v645_v41 = vpop.permute.xlu1 %644  ;;  %1284 = vperm.xlu1 %1950, %v2380_v46   ;;  %v636_v43 = vmul.f32 %v3607_v59, %v624_v49  ;;  %v683_v40 = vadd.f32 %v679_v31, %v642_v12  ;;  %v1838_v49 = vpack.c.bf16 %v3610_v47, %v2188_v6  ;;  %v686_v6 = vld [vmem:[%s3511_s4 + $0x8] sm:$0xff] }
 0x100   : > { %v637_v42 = vmul.f32 %v3607_v59, %v625_v27  ;;  %v687_v27 = vld [vmem:[%s3511_s4 + $0x10] sm:$0xff] }
 0x101   : > { %v640_v1 = vadd.f32 %v636_v43, %v599_v9 }
 0x102   : > { %v641_v61 = vadd.f32 %v637_v42, %v600_v62  ;;  %v2740_v13 = vpop.permute.xlu0 %1024 }
 0x103   : > { %v649_v44 = vpop.permute.xlu1 %648  ;;  %1951 = vset.pattern.permute.xlu1 %v3608_v21  ;;  %3614 = vst [vmem:[#allocation7_spill] sm:$0xff] %v2740_v13 }
 0x104   : > { %v653_v30 = vsel %vm652_vm7, %v645_v41, %v649_v44  ;;  %v655_v28 = vsel %vm652_vm7, %v649_v44, %v645_v41  ;;  %1400 = vperm.xlu1 %1951, %v2301_v22   ;;  %v684_v22 = vadd.f32 %v680_v36, %v643_v24  ;;  %v688_v41 = vld [vmem:[%s3511_s4 + $0x18] sm:$0xff] }
 0x105   : > { %v665_v18 = vmul.f32 %v2673_v17, %v653_v30  ;;  %v666_v33 = vmul.f32 %v2678_v35, %v655_v28 }
 0x106   : > { %v2742_v39 = vpop.permute.xlu0 %1088 }
 0x107   : > { %v678_v52 = vmul.f32 %v3609_v50, %v666_v33  ;;  %v677_v38 = vmul.f32 %v3609_v50, %v665_v18  ;;  %3615 = vst [vmem:[#allocation8_spill] sm:$0xff] %v2742_v39  ;;  %v704_v19 = vpop.permute.xlu1 %703 }
 0x108   : > { %1953 = vset.pattern.permute.xlu1 %v3603_v2  ;;  %v3611_v2 = vld [vmem:[#allocation6_spill] sm:$0xff] }
 0x109   : > { %v682_v60 = vadd.f32 %v678_v52, %v641_v61  ;;  %v681_v29 = vadd.f32 %v677_v38, %v640_v1  ;;  %1348 = vperm.xlu1 %1953, %v2380_v46   ;;  %v685_v46 = vld [vmem:[%s3511_s4] sm:$0xff] }
 0x10a   : > { %v2744_v32 = vpop.permute.xlu0 %1148 }
 0x10b   : > { %v1832_v63 = vpack.c.bf16 %v684_v22, %v682_v60  ;;  %v1834_v55 = vpack.c.bf16 %v683_v40, %v681_v29  ;;  %3616 = vst [vmem:[#allocation9_spill] sm:$0xff] %v2744_v32  ;;  %v2758_v20 = vpop.permute.xlu1 %713 }
 0x10d   : > { %1833 = vmatprep.subr.bf16.mxu0 %v1832_v63  ;;  %1848 = vmatprep.subr.bf16.mxu1 %v1832_v63 }
 0x10e   : > { %1835 = vmatpush1.bf16.msra.mxu0 %v1834_v55  ;;  %1850 = vmatpush1.bf16.msra.mxu1 %v1834_v55  ;;  %v2746_v51 = vpop.permute.xlu0 %1152 }
 0x10f   : > { %1837 = vmatprep.subr.bf16.mxu0 %v1836_v45  ;;  %1954 = vset.pattern.permute.xlu1 %v3608_v21  ;;  %3617 = vst [vmem:[#allocation14_spill] sm:$0xff] %v2746_v51  ;;  %v2762_v59 = vpop.permute.xlu1 %718 }
 0x110   : > { %1408 = vperm.xlu1 %1954, %v3611_v2   ;;  %1849 = vmatprep.subr.bf16.mxu1 %v1836_v45 }
 0x112   : > { %1839 = vmatpush1.bf16.msra.mxu0 %v1838_v49  ;;  %1851 = vmatpush1.bf16.msra.mxu1 %v1838_v49  ;;  %v2748_v25 = vpop.permute.xlu0 %1212 }
 0x113   : > { %3618 = vst [vmem:[#allocation15_spill] sm:$0xff] %v2748_v25 }
 0x114   : > { %1956 = vset.pattern.permute.xlu1 %v3612_v7  ;;  %v2766_v30 = vpop.permute.xlu1 %898 }
 0x115   : > { %1812 = vmatmul.mubr.msk.f32.vlgmr.msra.gmra.mrb[0].mxu0 %vm741_vm8, %v685_v46 }
 0x116   : > { %836 = vmatprep.mubr.f32.mxu0 %v3613_v8  ;;  %v2750_v5 = vpop.permute.xlu0 %1216 }
 0x117   : > { %3619 = vst [vmem:[#allocation5_spill] sm:$0xff] %v2750_v5 }
 0x119   : > { %1813 = vmatmul.mubr.msk.f32.gmra.mrb[2].mxu0 %vm741_vm8, %v686_v6  ;;  %v2776_v12 = vpop.permute.xlu1 %952 }
 0x11a   : > { %842 = vmatprep.mubr.f32.mxu0 %v3613_v8  ;;  %v2752_v16 = vpop.permute.xlu0 %1276 }
 0x11b   : > { %3620 = vst [vmem:[#allocation6_spill] sm:$0xff] %v2752_v16 }
 0x11d   : > { %1814 = vmatmul.mubr.msk.f32.gmra.mrb[4].mxu0 %vm741_vm8, %v687_v27 }
 0x11e   : > { %848 = vmatprep.mubr.f32.mxu0 %v3613_v8  ;;  %v2754_v4 = vpop.permute.xlu0 %1280  ;;  %v2792_v38 = vpop.permute.xlu1 %1016 }
 0x11f   : > { %3621 = vst [vmem:[#allocation17_spill] sm:$0xff] %v2754_v4 }
 0x121   : > { %1815 = vmatmul.mubr.msk.f32.gmra.mrb[6].mxu0 %vm741_vm8, %v688_v41 }
 0x122   : > { %854 = vmatprep.mubr.f32.mxu0 %v3613_v8  ;;  %v2756_v53 = vpop.permute.xlu0 %1340  ;;  %v2800_v22 = vpop.permute.xlu1 %1020 }
 0x123   : > { %3622 = vst [vmem:[#allocation18_spill] sm:$0xff] %v2756_v53 }
 0x126   : > { %v2760_v54 = vpop.permute.xlu0 %1344 }
 0x127   : > { %3623 = vst [vmem:[#allocation19_spill] sm:$0xff] %v2760_v54  ;;  %v2810_v29 = vpop.permute.xlu1 %908 }
 0x128   : > { %3629 = vst [vmem:[#allocation22_spill] sm:$0xff] %v2810_v29 }
 0x12a   : > { %v2764_v43 = vpop.permute.xlu0 %1404 }
 0x12b   : > { %3624 = vst [vmem:[#allocation20_spill] sm:$0xff] %v2764_v43  ;;  %v3647_v43 = vld [vmem:[#allocation11_spill] sm:$0xff] }
 0x12c   : > { %v2816_v40 = vpop.permute.xlu1 %960 }
 0x12d   : > { %3630 = vst [vmem:[#allocation23_spill] sm:$0xff] %v2816_v40 }
 0x12e   : > { %v2774_v18 = vpop.permute.xlu0 %1412 }
 0x12f   : > { %3625 = vst [vmem:[#allocation21_spill] sm:$0xff] %v2774_v18 }
 0x131   : > { %v2826_v63 = vpop.permute.xlu1 %1080 }
 0x132   : > { %v709_v61 = vpop.permute.xlu0 %708 }
 0x135   : > { %v2834_v47 = vpop.permute.xlu1 %1084 }
 0x136   : > { %3631 = vst [vmem:[#allocation24_spill] sm:$0xff] %v2834_v47 }
 0x13a   : > { %v2840_v49 = vpop.permute.xlu1 %1028 }
 0x13b   : > { %3632 = vst [vmem:[#allocation25_spill] sm:$0xff] %v2840_v49  ;;  %v692_v49 = vld [vmem:[%s3511_s4 + $0x38] sm:$0xff] }
 0x13f   : > { %v2850_v2 = vpop.permute.xlu1 %1144 }
 0x144   : > { %v2856_v46 = vpop.permute.xlu1 %1092 }
 0x145   : > { %3633 = vst [vmem:[#allocation26_spill] sm:$0xff] %v2856_v46 }
 0x165   : > { %v2867_v6 = vpop.permute.xlu1 %1208 }
 0x1e8   : > { %v832_v42 = vpop.f32.mrb[0].mxu0 }
 0x1e9   : > { %v833_v44 = vadd.f32 %v832_v42, %v704_v19  ;;  %v834_v21 = vpop.f32.mrb[1].mxu0  ;;  %v2878_v42 = vpop.permute.xlu1 %1156 }
 0x1ea   : > { %v835_v33 = vadd.f32 %v834_v21, %v704_v19  ;;  %3634 = vst [vmem:[#allocation27_spill] sm:$0xff] %v2878_v42 }
 0x1eb   : > { %v2768_v28 = vmax.f32 %v833_v44, 0.0 }
 0x1ec   : > { %v838_v62 = vpop.f32.mrb[2].mxu0  ;;  %v2782_v36 = vmax.f32 %v835_v33, 0.0 }
 0x1ed   : > { %983 = vrot.lane.b32.xlu0 %v2768_v28, %s2046_s16  ;;  %919 = vrot.lane.b32.xlu1 %v2768_v28, %s2044_s14  ;;  %v840_v9 = vpop.f32.mrb[3].mxu0  ;;  %v839_v52 = vadd.f32 %v838_v62, %v709_v61  ;;  %v2893_v44 = vpop.permute.xlu1 %1272 }
 0x1ee   : > { %v841_v55 = vadd.f32 %v840_v9, %v709_v61 }
 0x1ef   : > { %v2794_v60 = vmax.f32 %v839_v52, 0.0 }
 0x1f0   : > { %v844_v24 = vpop.f32.mrb[4].mxu0  ;;  %v2832_v45 = vmax.f32 %v841_v55, 0.0  ;;  %v2954_v55 = vld [vmem:[%s3514_s7 + $0x18] sm:$0xff] }
 0x1f1   : > { %v846_v31 = vpop.f32.mrb[5].mxu0  ;;  %1047 = vrot.lane.b32.xlu0 %v2768_v28, %s2048_s17  ;;  %1367 = vrot.lane.b32.xlu1 %v2768_v28, %s2057_s25  ;;  %v845_v7 = vadd.f32 %v844_v24, %v2758_v20  ;;  %v2899_v21 = vpop.permute.xlu1 %1220  ;;  %3643 = vst [vmem:[#allocation36_spill] sm:$0xff] %v2954_v55 }
 0x1f2   : > { %v847_v41 = vadd.f32 %v846_v31, %v2758_v20  ;;  %v691_v20 = vld [vmem:[%s3511_s4 + $0x30] sm:$0xff]  ;;  %3635 = vst [vmem:[#allocation28_spill] sm:$0xff] %v2899_v21 }
 0x1f3   : > { %v2869_v27 = vmax.f32 %v845_v7, 0.0  ;;  %1818 = vmatmul.mubr.msk.f32.vlgmr.msra.gmra.mrb[0].mxu1 %vm741_vm8, %v691_v20 }
 0x1f4   : > { %v2784_v50 = vpop.f32.mrb[6].mxu0  ;;  %v2876_v19 = vmax.f32 %v847_v41, 0.0  ;;  %872 = vmatprep.mubr.f32.mxu1 %v3613_v8 }
 0x1f5   : > { %v2786_v1 = vpop.f32.mrb[7].mxu0  ;;  %1111 = vrot.lane.b32.xlu0 %v2768_v28, %s2050_s21  ;;  %927 = vrot.lane.b32.xlu1 %v2782_v36, %s2044_s14  ;;  %v2909_v62 = vpop.permute.xlu1 %1336  ;;  %v851_v9 = vadd.f32 %v2784_v50, %v2762_v59 }
 0x1f6   : > { %3636 = vst [vmem:[#allocation29_spill] sm:$0xff] %v2909_v62  ;;  %v853_v24 = vadd.f32 %v2786_v1, %v2762_v59  ;;  %v2942_v59 = vld [vmem:[%s3514_s7] sm:$0xff]  ;;  %v2946_v1 = vpop.permute.xlu0 %956 }
 0x1f7   : > { %v2917_v33 = vmax.f32 %v851_v9, 0.0  ;;  %3641 = vst [vmem:[#allocation34_spill] sm:$0xff] %v2942_v59  ;;  %1819 = vmatmul.mubr.msk.f32.gmra.mrb[2].mxu1 %vm741_vm8, %v692_v49 }
 0x1f8   : > { %v2927_v61 = vmax.f32 %v853_v24, 0.0  ;;  %1535 = vmatprep.mubr.f32.mxu1 %v3613_v8 }
 0x1f9   : > { %1175 = vrot.lane.b32.xlu0 %v2768_v28, %s3626_s23  ;;  %1375 = vrot.lane.b32.xlu1 %v2782_v36, %s2057_s25  ;;  %3637 = vst [vmem:[#allocation30_spill] sm:$0xff] %v2917_v33  ;;  %v2921_v31 = vpop.permute.xlu1 %1284 }
 0x1fa   : > { %3638 = vst [vmem:[#allocation31_spill] sm:$0xff] %v2921_v31  ;;  %3639 = vst [vmem:[#allocation32_spill] sm:$0xff] %v2927_v61  ;;  %v2961_v41 = vpop.permute.xlu0 %964 }
 0x1fb   : > { %3645 = vst [vmem:[#allocation38_spill] sm:$0xff] %v2961_v41 }
 0x1fd   : > { %1239 = vrot.lane.b32.xlu0 %v2768_v28, %s3627_s24  ;;  %985 = vrot.lane.b32.xlu1 %v2794_v60, %s2046_s16  ;;  %v2933_v50 = vpop.permute.xlu1 %1400 }
 0x1fe   : > { %3640 = vst [vmem:[#allocation33_spill] sm:$0xff] %v2933_v50  ;;  %v3648_v50 = vld [vmem:[#allocation12_spill] sm:$0xff] }
 0x201   : > { %1303 = vrot.lane.b32.xlu0 %v2768_v28, %s3628_s29  ;;  %1049 = vrot.lane.b32.xlu1 %v2794_v60, %s2048_s17  ;;  %v2944_v52 = vpop.permute.xlu1 %1348 }
 0x202   : > { %3642 = vst [vmem:[#allocation35_spill] sm:$0xff] %v2944_v52 }
 0x205   : > { %991 = vrot.lane.b32.xlu0 %v2782_v36, %s2046_s16  ;;  %1113 = vrot.lane.b32.xlu1 %v2794_v60, %s2050_s21  ;;  %v2959_v7 = vpop.permute.xlu1 %1408 }
 0x206   : > { %3644 = vst [vmem:[#allocation37_spill] sm:$0xff] %v2959_v7 }
 0x209   : > { %1055 = vrot.lane.b32.xlu0 %v2782_v36, %s2048_s17  ;;  %1177 = vrot.lane.b32.xlu1 %v2794_v60, %s3626_s23 }
 0x20d   : > { %1119 = vrot.lane.b32.xlu0 %v2782_v36, %s2050_s21  ;;  %1241 = vrot.lane.b32.xlu1 %v2794_v60, %s3627_s24 }
 0x211   : > { %1183 = vrot.lane.b32.xlu0 %v2782_v36, %s3626_s23  ;;  %1305 = vrot.lane.b32.xlu1 %v2794_v60, %s3628_s29 }
 0x215   : > { %1247 = vrot.lane.b32.xlu0 %v2782_v36, %s3627_s24  ;;  %993 = vrot.lane.b32.xlu1 %v2832_v45, %s2046_s16 }
 0x219   : > { %1311 = vrot.lane.b32.xlu0 %v2782_v36, %s3628_s29  ;;  %1057 = vrot.lane.b32.xlu1 %v2832_v45, %s2048_s17 }
 0x21d   : > { %921 = vrot.lane.b32.xlu0 %v2794_v60, %s2044_s14  ;;  %1121 = vrot.lane.b32.xlu1 %v2832_v45, %s2050_s21 }
 0x221   : > { %1369 = vrot.lane.b32.xlu0 %v2794_v60, %s2057_s25  ;;  %1185 = vrot.lane.b32.xlu1 %v2832_v45, %s3626_s23 }
 0x225   : > { %929 = vrot.lane.b32.xlu0 %v2832_v45, %s2044_s14  ;;  %1249 = vrot.lane.b32.xlu1 %v2832_v45, %s3627_s24 }
 0x229   : > { %1377 = vrot.lane.b32.xlu0 %v2832_v45, %s2057_s25  ;;  %1313 = vrot.lane.b32.xlu1 %v2832_v45, %s3628_s29 }
 0x22d   : > { %1371 = vrot.lane.b32.xlu0 %v2869_v27, %s2057_s25  ;;  %923 = vrot.lane.b32.xlu1 %v2869_v27, %s2044_s14 }
 0x231   : > { %931 = vrot.lane.b32.xlu0 %v2876_v19, %s2044_s14  ;;  %987 = vrot.lane.b32.xlu1 %v2869_v27, %s2046_s16 }
 0x235   : > { %995 = vrot.lane.b32.xlu0 %v2876_v19, %s2046_s16  ;;  %1051 = vrot.lane.b32.xlu1 %v2869_v27, %s2048_s17 }
 0x239   : > { %1059 = vrot.lane.b32.xlu0 %v2876_v19, %s2048_s17  ;;  %1115 = vrot.lane.b32.xlu1 %v2869_v27, %s2050_s21 }
 0x23d   : > { %1123 = vrot.lane.b32.xlu0 %v2876_v19, %s2050_s21  ;;  %1179 = vrot.lane.b32.xlu1 %v2869_v27, %s3626_s23 }
 0x241   : > { %1187 = vrot.lane.b32.xlu0 %v2876_v19, %s3626_s23  ;;  %1243 = vrot.lane.b32.xlu1 %v2869_v27, %s3627_s24 }
 0x245   : > { %1315 = vrot.lane.b32.xlu0 %v2876_v19, %s3628_s29  ;;  %1307 = vrot.lane.b32.xlu1 %v2869_v27, %s3628_s29 }
 0x249   : > { %1245 = vrot.lane.b32.xlu0 %v2917_v33, %s3627_s24  ;;  %1251 = vrot.lane.b32.xlu1 %v2876_v19, %s3627_s24 }
 0x24d   : > { %1253 = vrot.lane.b32.xlu0 %v2927_v61, %s3627_s24  ;;  %925 = vrot.lane.b32.xlu1 %v2917_v33, %s2044_s14  ;;  %s2059_s24 = smov 2  }
 0x251   : > { %1379 = vrot.lane.b32.xlu0 %v2876_v19, %s2057_s25  ;;  %989 = vrot.lane.b32.xlu1 %v2917_v33, %s2046_s16 }
 0x255   : > { %1441 = vperm.xlu0 %1955, %v2942_v59   ;;  %1053 = vrot.lane.b32.xlu1 %v2917_v33, %s2048_s17 }
 0x259   : > { %1456 = vperm.xlu0 %1955, %v2954_v55   ;;  %1117 = vrot.lane.b32.xlu1 %v2917_v33, %s2050_s21 }
 0x25d   : > { %1181 = vrot.lane.b32.xlu1 %v2917_v33, %s3626_s23 }
 0x25f   : > { %v984_v20 = vpop.permute.xlu0 %983  ;;  %v920_v9 = vpop.permute.xlu1 %919 }
 0x261   : > { %1309 = vrot.lane.b32.xlu1 %v2917_v33, %s3628_s29 }
 0x263   : > { %v1048_v24 = vpop.permute.xlu0 %1047  ;;  %v2967_v59 = vpop.permute.xlu1 %1367 }
 0x265   : > { %1373 = vrot.lane.b32.xlu1 %v2917_v33, %s2057_s25 }
 0x267   : > { %v1112_v55 = vpop.permute.xlu0 %1111  ;;  %v928_v18 = vpop.permute.xlu1 %927 }
 0x268   : > { %v935_v51 = vsel %vm365_vm0, %v920_v9, %v928_v18  ;;  %v939_v39 = vsel %vm365_vm0, %v928_v18, %v920_v9 }
 0x269   : > { %933 = vrot.lane.b32.xlu1 %v2927_v61, %s2044_s14  ;;  %v943_v8 = vmul.f32 %v939_v39, %v3647_v43  ;;  %v944_v40 = vmul.f32 %v935_v51, %v3648_v50  ;;  %s1981_s14 = sshll.u32 %s2061_s26, 4  ;;  %s1982_s14 = int_to_ptr.vmem [resolvable:$false] %s1981_s14 }
 0x26b   : > { %v1176_v7 = vpop.permute.xlu0 %1175  ;;  %v2973_v54 = vpop.permute.xlu1 %1375  ;;  %v967_v51 = vmul.f32 %v2776_v12, %v943_v8 }
 0x26d   : > { %997 = vrot.lane.b32.xlu1 %v2927_v61, %s2046_s16 }
 0x26f   : > { %v1240_v52 = vpop.permute.xlu0 %1239  ;;  %v2977_v21 = vpop.permute.xlu1 %985 }
 0x271   : > { %1061 = vrot.lane.b32.xlu1 %v2927_v61, %s2048_s17  ;;  %s1807_s17 = sshll.u32 %s323_s27, 6 }
 0x273   : > { %v2981_v31 = vpop.permute.xlu0 %1303  ;;  %v2983_v4 = vpop.permute.xlu1 %1049 }
 0x275   : > { %1125 = vrot.lane.b32.xlu1 %v2927_v61, %s2050_s21  ;;  %s2060_s21 = smov 124  }
 0x277   : > { %v992_v42 = vpop.permute.xlu0 %991  ;;  %v2987_v46 = vpop.permute.xlu1 %1113 }
 0x278   : > { %v999_v53 = vsel %vm406_vm1, %v984_v20, %v992_v42  ;;  %v1003_v16 = vsel %vm406_vm1, %v992_v42, %v984_v20 }
 0x279   : > { %1189 = vrot.lane.b32.xlu1 %v2927_v61, %s3626_s23  ;;  %v1007_v9 = vmul.f32 %v1003_v16, %v2465_v14  ;;  %v912_v16 = vmul.f32 %v2736_v57, %v2782_v36 }
 0x27b   : > { %v1056_v41 = vpop.permute.xlu0 %1055  ;;  %v2995_v29 = vpop.permute.xlu1 %1177  ;;  %v1031_v8 = vmul.f32 %v2792_v38, %v1007_v9 }
 0x27c   : > { %v1063_v25 = vsel %vm447_vm2, %v1048_v24, %v1056_v41  ;;  %v1067_v18 = vsel %vm447_vm2, %v1056_v41, %v1048_v24 }
 0x27d   : > { %1317 = vrot.lane.b32.xlu1 %v2927_v61, %s3628_s29  ;;  %v1071_v47 = vmul.f32 %v1067_v18, %v2473_v10  ;;  %v1072_v42 = vmul.f32 %v1063_v25, %v2475_v11 }
 0x27f   : > { %v1120_v33 = vpop.permute.xlu0 %1119  ;;  %v3000_v5 = vpop.permute.xlu1 %1241 }
 0x280   : > { %v1127_v20 = vsel %vm488_vm3, %v1112_v55, %v1120_v33  ;;  %v1131_v41 = vsel %vm488_vm3, %v1120_v33, %v1112_v55 }
 0x281   : > { %1381 = vrot.lane.b32.xlu1 %v2927_v61, %s2057_s25  ;;  %v3649_v61 = vld [vmem:[#allocation13_spill] sm:$0xff]  ;;  %v1135_v33 = vmul.f32 %v1131_v41, %v2477_v3  ;;  %v1136_v55 = vmul.f32 %v1127_v20, %v2486_v0  ;;  %s1831_s25 = sshll.u32 %s2134_s13, 10  ;;  %s3465_s13 = scalar_lea.sflag [#allocation3], %s323_s27 }
 0x282   : > { %v1008_v32 = vmul.f32 %v999_v53, %v3649_v61  ;;  %v911_v53 = vmul.f32 %v2736_v57, %v2768_v28  ;;  %v1095_v57 = vmul.f32 %v2826_v63, %v1071_v47  ;;  %v1096_v28 = vmul.f32 %v2826_v63, %v1072_v42  ;;  %v3059_v42 = vld [vmem:[%s3514_s7 + $0x10] sm:$0xff]  ;;  %s3459_s22 = scalar_lea.hbm %s3516_s9, %s1831_s25 }
 0x283   : > { %v1184_v49 = vpop.permute.xlu0 %1183  ;;  %v3008_v13 = vpop.permute.xlu1 %1305  ;;  %v1159_v20 = vmul.f32 %v2850_v2, %v1135_v33  ;;  %v1160_v41 = vmul.f32 %v2850_v2, %v1136_v55 }
 0x284   : > { %3646 = vst [vmem:[#allocation39_spill] sm:$0xff] %v3008_v13  ;;  %v968_v13 = vmul.f32 %v2776_v12, %v944_v40  ;;  %v1032_v12 = vmul.f32 %v2792_v38, %v1008_v32  ;;  %v1191_v40 = vsel %vm529_vm4, %v1176_v7, %v1184_v49  ;;  %v1195_v25 = vsel %vm529_vm4, %v1184_v49, %v1176_v7  ;;  %v3047_v32 = vld [vmem:[%s3514_s7 + $0x8] sm:$0xff] }
 0x285   : > { %v975_v36 = vadd.f32 %v967_v51, %v911_v53  ;;  %v1199_v38 = vmul.f32 %v1191_v40, %v2488_v26  ;;  %v1200_v7 = vmul.f32 %v1195_v25, %v2497_v15  ;;  %1446 = vperm.xlu1 %1956, %v3047_v32  }
 0x286   : > { %v976_v23 = vadd.f32 %v968_v13, %v912_v16 }
 0x287   : > { %v1248_v62 = vpop.permute.xlu0 %1247  ;;  %v994_v39 = vpop.permute.xlu1 %993  ;;  %v1039_v49 = vadd.f32 %v1031_v8, %v975_v36  ;;  %v1223_v8 = vmul.f32 %v2867_v6, %v1199_v38 }
 0x288   : > { %v1040_v9 = vadd.f32 %v1032_v12, %v976_v23  ;;  %v1255_v13 = vsel %vm570_vm5, %v1240_v52, %v1248_v62  ;;  %v1259_v47 = vsel %vm570_vm5, %v1248_v62, %v1240_v52  ;;  %v1000_v23 = vsel %vm406_vm1, %v2977_v21, %v994_v39 }
 0x289   : > { %v1004_v16 = vsel %vm406_vm1, %v994_v39, %v2977_v21  ;;  %v1383_v62 = vsel %vm652_vm7, %v2967_v59, %v2973_v54  ;;  %v1387_v52 = vsel %vm652_vm7, %v2973_v54, %v2967_v59  ;;  %v1103_v53 = vadd.f32 %v1095_v57, %v1039_v49  ;;  %1451 = vperm.xlu1 %1956, %v3059_v42  }
 0x28a   : > { %v1104_v2 = vadd.f32 %v1096_v28, %v1040_v9  ;;  %v1224_v12 = vmul.f32 %v2867_v6, %v1200_v7  ;;  %v1263_v40 = vmul.f32 %v1255_v13, %v2503_v56  ;;  %v1264_v21 = vmul.f32 %v1259_v47, %v2505_v48 }
 0x28b   : > { %v1312_v24 = vpop.permute.xlu0 %1311  ;;  %v1058_v18 = vpop.permute.xlu1 %1057  ;;  %v1009_v39 = vmul.f32 %v1004_v16, %v2465_v14  ;;  %v1010_v25 = vmul.f32 %v1000_v23, %v3649_v61  ;;  %v913_v54 = vmul.f32 %v2766_v30, %v2794_v60  ;;  %v914_v59 = vmul.f32 %v2766_v30, %v2832_v45 }
 0x28c   : > { %v1167_v6 = vadd.f32 %v1159_v20, %v1103_v53  ;;  %v1168_v36 = vadd.f32 %v1160_v41, %v1104_v2  ;;  %v3092_v57 = vmul.f32 %v2738_v37, %v2869_v27  ;;  %v3096_v28 = vmul.f32 %v2738_v37, %v2876_v19 }
 0x28d   : > { %v3099_v38 = vmul.f32 %v2673_v17, %v1383_v62  ;;  %v3102_v7 = vmul.f32 %v2678_v35, %v1387_v52  ;;  %v1064_v30 = vsel %vm447_vm2, %v2983_v4, %v1058_v18  ;;  %v1068_v60 = vsel %vm447_vm2, %v1058_v18, %v2983_v4 }
 0x28e   : > { %v1231_v45 = vadd.f32 %v1223_v8, %v1167_v6  ;;  %v1232_v27 = vadd.f32 %v1224_v12, %v1168_v36  ;;  %v1287_v49 = vmul.f32 %v2893_v44, %v1263_v40  ;;  %v1288_v37 = vmul.f32 %v2893_v44, %v1264_v21  ;;  %v3651_v6 = vld [vmem:[#allocation24_spill] sm:$0xff] }
 0x28f   : > { %v922_v63 = vpop.permute.xlu0 %921  ;;  %v1122_v51 = vpop.permute.xlu1 %1121  ;;  %v1033_v19 = vmul.f32 %v2800_v22, %v1009_v39  ;;  %v1034_v9 = vmul.f32 %v2800_v22, %v1010_v25  ;;  %v1319_v13 = vsel %vm611_vm6, %v2981_v31, %v1312_v24  ;;  %v1323_v47 = vsel %vm611_vm6, %v1312_v24, %v2981_v31  ;;  %v3650_v39 = vld [vmem:[#allocation16_spill] sm:$0xff] }
 0x290   : > { %v1073_v18 = vmul.f32 %v1068_v60, %v2473_v10  ;;  %v1074_v41 = vmul.f32 %v1064_v30, %v2475_v11  ;;  %v1128_v23 = vsel %vm488_vm3, %v2987_v46, %v1122_v51  ;;  %v1132_v31 = vsel %vm488_vm3, %v1122_v51, %v2987_v46 }
 0x291   : > { %v1295_v62 = vadd.f32 %v1287_v49, %v1231_v45  ;;  %v1296_v52 = vadd.f32 %v1288_v37, %v1232_v27  ;;  %v1327_v21 = vmul.f32 %v1319_v13, %v2547_v34  ;;  %v1328_v25 = vmul.f32 %v1323_v47, %v3650_v39  ;;  %v3652_v47 = vld [vmem:[#allocation39_spill] sm:$0xff] }
 0x292   : > { %v1098_v36 = vmul.f32 %v3651_v6, %v1074_v41 }
 0x293   : > { %v3084_v33 = vpop.permute.xlu0 %1369  ;;  %v1186_v55 = vpop.permute.xlu1 %1185 }
 0x294   : > { %v1192_v53 = vsel %vm529_vm4, %v2995_v29, %v1186_v55 }
 0x295   : > { %v1201_v45 = vmul.f32 %v1192_v53, %v2488_v26  ;;  %v3655_v53 = vld [vmem:[#allocation15_spill] sm:$0xff] }
 0x297   : > { %v930_v20 = vpop.permute.xlu0 %929  ;;  %v1250_v4 = vpop.permute.xlu1 %1249 }
 0x298   : > { %v936_v44 = vsel %vm365_vm0, %v922_v63, %v930_v20  ;;  %v940_v22 = vsel %vm365_vm0, %v930_v20, %v922_v63  ;;  %v1196_v63 = vsel %vm529_vm4, %v1186_v55, %v2995_v29  ;;  %v1256_v46 = vsel %vm570_vm5, %v3000_v5, %v1250_v4 }
 0x299   : > { %v945_v24 = vmul.f32 %v940_v22, %v3647_v43  ;;  %v946_v16 = vmul.f32 %v936_v44, %v3648_v50  ;;  %v1260_v51 = vsel %vm570_vm5, %v1250_v4, %v3000_v5  ;;  %v1137_v29 = vmul.f32 %v1132_v31, %v2477_v3  ;;  %v3654_v22 = vld [vmem:[#allocation9_spill] sm:$0xff] }
 0x29a   : > { %v1138_v55 = vmul.f32 %v1128_v23, %v2486_v0  ;;  %v1202_v5 = vmul.f32 %v1196_v63, %v2497_v15  ;;  %v1265_v27 = vmul.f32 %v1256_v46, %v2503_v56  ;;  %v1266_v49 = vmul.f32 %v1260_v51, %v2505_v48 }
 0x29b   : > { %v969_v2 = vmul.f32 %v2946_v1, %v945_v24  ;;  %v970_v8 = vmul.f32 %v2946_v1, %v946_v16  ;;  %v1378_v12 = vpop.permute.xlu0 %1377  ;;  %v1314_v40 = vpop.permute.xlu1 %1313  ;;  %v1097_v1 = vmul.f32 %v3651_v6, %v1073_v18  ;;  %v3653_v18 = vld [vmem:[#allocation29_spill] sm:$0xff]  ;;  %v1161_v23 = vmul.f32 %v3654_v22, %v1137_v29 }
 0x29c   : > { %v1320_v20 = vsel %vm611_vm6, %v3652_v47, %v1314_v40  ;;  %v1324_v4 = vsel %vm611_vm6, %v1314_v40, %v3652_v47  ;;  %v1351_v41 = vmul.f32 %v3653_v18, %v1327_v21  ;;  %v1352_v44 = vmul.f32 %v3653_v18, %v1328_v25  ;;  %v3656_v21 = vld [vmem:[#allocation6_spill] sm:$0xff] }
 0x29d   : > { %v977_v30 = vadd.f32 %v969_v2, %v913_v54  ;;  %v978_v60 = vadd.f32 %v970_v8, %v914_v59  ;;  %v1384_v24 = vsel %vm652_vm7, %v3084_v33, %v1378_v12  ;;  %v1388_v16 = vsel %vm652_vm7, %v1378_v12, %v3084_v33 }
 0x29e   : > { %v1225_v63 = vmul.f32 %v3655_v53, %v1201_v45  ;;  %v1226_v2 = vmul.f32 %v3655_v53, %v1202_v5  ;;  %v1329_v8 = vmul.f32 %v1320_v20, %v2547_v34  ;;  %v1330_v46 = vmul.f32 %v1324_v4, %v3650_v39  ;;  %v3658_v20 = vld [vmem:[#allocation23_spill] sm:$0xff] }
 0x29f   : > { %v1041_v37 = vadd.f32 %v1033_v19, %v977_v30  ;;  %v1042_v13 = vadd.f32 %v1034_v9, %v978_v60  ;;  %v3164_v54 = vpop.permute.xlu0 %1371  ;;  %v924_v59 = vpop.permute.xlu1 %923  ;;  %v1162_v19 = vmul.f32 %v3654_v22, %v1138_v55  ;;  %v1289_v25 = vmul.f32 %v3656_v21, %v1265_v27 }
 0x2a0   : > { %v1290_v29 = vmul.f32 %v3656_v21, %v1266_v49  ;;  %v1394_v33 = vmul.f32 %v2678_v35, %v1388_v16  ;;  %v1359_v27 = vadd.f32 %v1351_v41, %v1295_v62  ;;  %v1360_v49 = vadd.f32 %v1352_v44, %v1296_v52  ;;  %v3660_v41 = vld [vmem:[#allocation20_spill] sm:$0xff] }
 0x2a1   : > { %v1105_v9 = vadd.f32 %v1097_v1, %v1041_v37  ;;  %v1106_v31 = vadd.f32 %v1098_v36, %v1042_v13  ;;  %v1393_v1 = vmul.f32 %v2673_v17, %v1384_v24  ;;  %v3657_v37 = vld [vmem:[#allocation18_spill] sm:$0xff] }
 0x2a2   : > { %v1353_v13 = vmul.f32 %v3657_v37, %v1329_v8  ;;  %v1354_v17 = vmul.f32 %v3657_v37, %v1330_v46 }
 0x2a3   : > { %v1169_v51 = vadd.f32 %v1161_v23, %v1105_v9  ;;  %v1170_v40 = vadd.f32 %v1162_v19, %v1106_v31  ;;  %v932_v55 = vpop.permute.xlu0 %931  ;;  %v988_v6 = vpop.permute.xlu1 %987  ;;  %v3659_v23 = vld [vmem:[#allocation33_spill] sm:$0xff]  ;;  %v1417_v44 = vmul.f32 %v3660_v41, %v1393_v1  ;;  %v1418_v31 = vmul.f32 %v3660_v41, %v1394_v33 }
 0x2a4   : > { %v937_v12 = vsel %vm365_vm0, %v924_v59, %v932_v55  ;;  %v941_v36 = vsel %vm365_vm0, %v932_v55, %v924_v59  ;;  %v1415_v19 = vmul.f32 %v3659_v23, %v3099_v38  ;;  %v1416_v9 = vmul.f32 %v3659_v23, %v3102_v7 }
 0x2a5   : > { %v1233_v30 = vadd.f32 %v1225_v63, %v1169_v51  ;;  %v1234_v60 = vadd.f32 %v1226_v2, %v1170_v40  ;;  %v947_v45 = vmul.f32 %v941_v36, %v3647_v43  ;;  %v948_v5 = vmul.f32 %v937_v12, %v3648_v50 }
 0x2a6   : > { %v1423_v53 = vadd.f32 %v1415_v19, %v1359_v27  ;;  %v1424_v2 = vadd.f32 %v1416_v9, %v1360_v49 }
 0x2a7   : > { %v1297_v47 = vadd.f32 %v1289_v25, %v1233_v30  ;;  %v1298_v35 = vadd.f32 %v1290_v29, %v1234_v60  ;;  %v971_v4 = vmul.f32 %v3658_v20, %v947_v45  ;;  %v972_v18 = vmul.f32 %v3658_v20, %v948_v5  ;;  %v996_v22 = vpop.permute.xlu0 %995  ;;  %v1052_v59 = vpop.permute.xlu1 %1051  ;;  %v3661_v25 = vld [vmem:[#allocation7_spill] sm:$0xff]  ;;  %v3662_v60 = vld [vmem:[#allocation8_spill] sm:$0xff] }
 0x2a8   : > { %v1001_v62 = vsel %vm406_vm1, %v988_v6, %v996_v22  ;;  %v1005_v52 = vsel %vm406_vm1, %v996_v22, %v988_v6 }
 0x2a9   : > { %v1361_v24 = vadd.f32 %v1353_v13, %v1297_v47  ;;  %v1362_v16 = vadd.f32 %v1354_v17, %v1298_v35  ;;  %v1011_v63 = vmul.f32 %v1005_v52, %v2465_v14  ;;  %v1012_v38 = vmul.f32 %v1001_v62, %v3649_v61 }
 0x2aa   : > { %v979_v7 = vadd.f32 %v971_v4, %v3092_v57  ;;  %v980_v46 = vadd.f32 %v972_v18, %v3096_v28  ;;  %v3663_v4 = vld [vmem:[#allocation14_spill] sm:$0xff] }
 0x2ab   : > { %v1425_v8 = vadd.f32 %v1417_v44, %v1361_v24  ;;  %v1060_v51 = vpop.permute.xlu0 %1059  ;;  %v1116_v40 = vpop.permute.xlu1 %1115  ;;  %v1426_v21 = vadd.f32 %v1418_v31, %v1362_v16  ;;  %v1035_v29 = vmul.f32 %v3661_v25, %v1011_v63  ;;  %v1036_v55 = vmul.f32 %v3661_v25, %v1012_v38 }
 0x2ac   : > { %v1065_v6 = vsel %vm447_vm2, %v1052_v59, %v1060_v51  ;;  %v1069_v1 = vsel %vm447_vm2, %v1060_v51, %v1052_v59 }
 0x2ad   : > { %v1075_v33 = vmul.f32 %v1069_v1, %v2473_v10  ;;  %v1076_v12 = vmul.f32 %v1065_v6, %v2475_v11  ;;  %v1840_v57 = vpack.c.bf16 %v1426_v21, %v1424_v2  ;;  %v1842_v36 = vpack.c.bf16 %v1425_v8, %v1423_v53 }
 0x2ae   : > { %v1043_v28 = vadd.f32 %v1035_v29, %v979_v7  ;;  %v1044_v30 = vadd.f32 %v1036_v55, %v980_v46 }
 0x2af   : > { %v1099_v45 = vmul.f32 %v3662_v60, %v1075_v33  ;;  %v1100_v5 = vmul.f32 %v3662_v60, %v1076_v12  ;;  %v1124_v27 = vpop.permute.xlu0 %1123  ;;  %1841 = vmatprep.subr.bf16.mxu1 %v1840_v57  ;;  %v1180_v49 = vpop.permute.xlu1 %1179  ;;  %v3664_v12 = vld [vmem:[#allocation5_spill] sm:$0xff] }
 0x2b0   : > { %v1129_v37 = vsel %vm488_vm3, %v1116_v40, %v1124_v27  ;;  %v1133_v13 = vsel %vm488_vm3, %v1124_v27, %v1116_v40  ;;  %1843 = vmatpush1.bf16.msra.mxu1 %v1842_v36 }
 0x2b1   : > { %v1107_v17 = vadd.f32 %v1099_v45, %v1043_v28  ;;  %v1108_v47 = vadd.f32 %v1100_v5, %v1044_v30  ;;  %v1139_v35 = vmul.f32 %v1133_v13, %v2477_v3  ;;  %v1140_v20 = vmul.f32 %v1129_v37, %v2486_v0  ;;  %v3665_v28 = vld [vmem:[#allocation30_spill] sm:$0xff]  ;;  %v3667_v45 = vld [vmem:[#allocation32_spill] sm:$0xff] }
 0x2b2   : > { %v3666_v30 = vld [vmem:[#allocation22_spill] sm:$0xff] }
 0x2b3   : > { %v1163_v18 = vmul.f32 %v3663_v4, %v1139_v35  ;;  %v1164_v22 = vmul.f32 %v3663_v4, %v1140_v20  ;;  %v1244_v59 = vpop.permute.xlu1 %1243  ;;  %v1188_v16 = vpop.permute.xlu0 %1187  ;;  %v917_v60 = vmul.f32 %v3666_v30, %v3665_v28  ;;  %v918_v5 = vmul.f32 %v3666_v30, %v3667_v45 }
 0x2b4   : > { %v1193_v2 = vsel %vm529_vm4, %v1180_v49, %v1188_v16  ;;  %v1197_v8 = vsel %vm529_vm4, %v1188_v16, %v1180_v49 }
 0x2b5   : > { %v1171_v23 = vadd.f32 %v1163_v18, %v1107_v17  ;;  %v1172_v19 = vadd.f32 %v1164_v22, %v1108_v47  ;;  %v1203_v46 = vmul.f32 %v1193_v2, %v2488_v26  ;;  %v1204_v51 = vmul.f32 %v1197_v8, %v2497_v15  ;;  %v3668_v17 = vld [vmem:[#allocation38_spill] sm:$0xff] }
 0x2b7   : > { %v1308_v9 = vpop.permute.xlu1 %1307  ;;  %v1316_v63 = vpop.permute.xlu0 %1315  ;;  %v1227_v57 = vmul.f32 %v3664_v12, %v1203_v46  ;;  %v1228_v36 = vmul.f32 %v3664_v12, %v1204_v51 }
 0x2b9   : > { %v1235_v18 = vadd.f32 %v1227_v57, %v1171_v23  ;;  %v1236_v22 = vadd.f32 %v1228_v36, %v1172_v19  ;;  %v3669_v19 = vld [vmem:[#allocation25_spill] sm:$0xff] }
 0x2bb   : > { %v1252_v62 = vpop.permute.xlu1 %1251  ;;  %v1246_v40 = vpop.permute.xlu0 %1245 }
 0x2bc   : > { %v1261_v16 = vsel %vm570_vm5, %v1252_v62, %v1244_v59 }
 0x2bf   : > { %v926_v52 = vpop.permute.xlu1 %925  ;;  %v1254_v27 = vpop.permute.xlu0 %1253 }
 0x2c0   : > { %v1262_v23 = vsel %vm570_vm5, %v1254_v27, %v1246_v40 }
 0x2c3   : > { %v990_v41 = vpop.permute.xlu1 %989 }
 0x2c7   : > { %v1054_v44 = vpop.permute.xlu1 %1053 }
 0x2cb   : > { %v1118_v31 = vpop.permute.xlu1 %1117 }
 0x2cf   : > { %v3226_v24 = vpop.permute.xlu1 %1181 }
 0x2d3   : > { %v3228_v53 = vpop.permute.xlu1 %1309 }
 0x2d7   : > { %v3230_v38 = vpop.permute.xlu1 %1373 }
 0x2db   : > { %v934_v7 = vpop.permute.xlu1 %933 }
 0x2dc   : > { %v938_v21 = vsel %vm365_vm0, %v926_v52, %v934_v7  ;;  %v942_v25 = vsel %vm365_vm0, %v934_v7, %v926_v52 }
 0x2dd   : > { %v949_v55 = vmul.f32 %v942_v25, %v3647_v43  ;;  %v950_v6 = vmul.f32 %v938_v21, %v3648_v50  ;;  %v1321_v43 = vsel %vm611_vm6, %v1308_v9, %v1316_v63  ;;  %v1325_v50 = vsel %vm611_vm6, %v1316_v63, %v1308_v9 }
 0x2de   : > { %v1258_v63 = vsel %vm570_vm5, %v1246_v40, %v1254_v27 }
 0x2df   : > { %v998_v29 = vpop.permute.xlu1 %997  ;;  %v973_v47 = vmul.f32 %v3668_v17, %v949_v55  ;;  %v974_v35 = vmul.f32 %v3668_v17, %v950_v6  ;;  %v1268_v55 = vmul.f32 %v1261_v16, %v2505_v48  ;;  %v1269_v6 = vmul.f32 %v1258_v63, %v2503_v56 }
 0x2e0   : > { %v1002_v1 = vsel %vm406_vm1, %v990_v41, %v998_v29  ;;  %v1006_v33 = vsel %vm406_vm1, %v998_v29, %v990_v41  ;;  %v1257_v41 = vsel %vm570_vm5, %v1244_v59, %v1252_v62  ;;  %v1380_v59 = vpop.permute.xlu0 %1379  ;;  %v3670_v62 = vld [vmem:[#allocation26_spill] sm:$0xff] }
 0x2e1   : > { %v1013_v49 = vmul.f32 %v1006_v33, %v2465_v14  ;;  %v1014_v37 = vmul.f32 %v1002_v1, %v3649_v61  ;;  %v1331_v14 = vmul.f32 %v1321_v43, %v2547_v34  ;;  %v1332_v61 = vmul.f32 %v1325_v50, %v3650_v39  ;;  %v3672_v43 = vld [vmem:[#allocation17_spill] sm:$0xff] }
 0x2e2   : > { %v981_v2 = vadd.f32 %v973_v47, %v917_v60  ;;  %v982_v8 = vadd.f32 %v974_v35, %v918_v5  ;;  %v1267_v29 = vmul.f32 %v1257_v41, %v2503_v56  ;;  %v1270_v1 = vmul.f32 %v1262_v23, %v2505_v48  ;;  %v3674_v47 = vld [vmem:[#allocation28_spill] sm:$0xff] }
 0x2e3   : > { %v1062_v13 = vpop.permute.xlu1 %1061  ;;  %v1292_v27 = vmul.f32 %v3672_v43, %v1268_v55 }
 0x2e4   : > { %v1066_v20 = vsel %vm447_vm2, %v1054_v44, %v1062_v13  ;;  %v1070_v4 = vsel %vm447_vm2, %v1062_v13, %v1054_v44  ;;  %v1291_v50 = vmul.f32 %v3672_v43, %v1267_v29  ;;  %v1442_v43 = vpop.permute.xlu0 %1441 }
 0x2e5   : > { %v1077_v9 = vmul.f32 %v1070_v4, %v2473_v10  ;;  %v1078_v52 = vmul.f32 %v1066_v20, %v2475_v11  ;;  %v1037_v10 = vmul.f32 %v3669_v19, %v1013_v49  ;;  %v1038_v11 = vmul.f32 %v3669_v19, %v1014_v37  ;;  %v3673_v49 = vld [vmem:[#allocation31_spill] sm:$0xff]  ;;  %v1976_v4 = vld [vmem:[%s3508_s1 + $0x18] ss:$0 sm:$0xff] }
 0x2e6   : > { %v1294_v37 = vmul.f32 %v3673_v49, %v1270_v1  ;;  %v3678_v1 = vld [vmem:[#allocation21_spill] sm:$0xff] }
 0x2e7   : > { %v1126_v44 = vpop.permute.xlu1 %1125  ;;  %v1101_v51 = vmul.f32 %v3670_v62, %v1077_v9  ;;  %v1102_v21 = vmul.f32 %v3670_v62, %v1078_v52  ;;  %v1045_v33 = vadd.f32 %v1037_v10, %v981_v2  ;;  %v1046_v12 = vadd.f32 %v1038_v11, %v982_v8  ;;  %v3675_v8 = vld [vmem:[#allocation35_spill] sm:$0xff] }
 0x2e8   : > { %v1130_v7 = vsel %vm488_vm3, %v1118_v31, %v1126_v44  ;;  %v1134_v46 = vsel %vm488_vm3, %v1126_v44, %v1118_v31  ;;  %v3671_v31 = vld [vmem:[#allocation27_spill] sm:$0xff]  ;;  %v1299_v10 = vadd.f32 %v1291_v50, %v1235_v18  ;;  %v1300_v11 = vadd.f32 %v1292_v27, %v1236_v22 }
 0x2e9   : > { %v1141_v40 = vmul.f32 %v1134_v46, %v2477_v3  ;;  %v1142_v25 = vmul.f32 %v1130_v7, %v2486_v0  ;;  %v1385_v3 = vsel %vm652_vm7, %v3164_v54, %v1380_v59  ;;  %v1389_v0 = vsel %vm652_vm7, %v1380_v59, %v3164_v54  ;;  %v3676_v62 = vld [vmem:[#allocation19_spill] sm:$0xff] }
 0x2ea   : > { %v1109_v30 = vadd.f32 %v1101_v51, %v1045_v33  ;;  %v1110_v60 = vadd.f32 %v1102_v21, %v1046_v12  ;;  %v1293_v54 = vmul.f32 %v3673_v49, %v1269_v6  ;;  %v1396_v9 = vmul.f32 %v1976_v4, %v1389_v0  ;;  %v1436_v0 = vld [vmem:[%s3513_s6 + $0x8] sm:$0xff] }
 0x2eb   : > { %v1165_v57 = vmul.f32 %v3671_v31, %v1141_v40  ;;  %v1166_v36 = vmul.f32 %v3671_v31, %v1142_v25  ;;  %v1190_v28 = vpop.permute.xlu1 %1189  ;;  %v1355_v51 = vmul.f32 %v3676_v62, %v1331_v14  ;;  %v1356_v21 = vmul.f32 %v3676_v62, %v1332_v61 }
 0x2ec   : > { %v1194_v56 = vsel %vm529_vm4, %v3226_v24, %v1190_v28  ;;  %v1198_v48 = vsel %vm529_vm4, %v1190_v28, %v3226_v24  ;;  %v1435_v28 = vld [vmem:[%s3513_s6] sm:$0xff] }
 0x2ed   : > { %v1205_v45 = vmul.f32 %v1194_v56, %v2488_v26  ;;  %v1206_v5 = vmul.f32 %v1198_v48, %v2497_v15  ;;  %v1173_v13 = vadd.f32 %v1165_v57, %v1109_v30  ;;  %v1174_v17 = vadd.f32 %v1166_v36, %v1110_v60  ;;  %v1975_v26 = vld [vmem:[%s3508_s1 + $0x10] ss:$0 sm:$0xff]  ;;  %v3351_v56 = vpop.f32.mrb[0].mxu1  ;;  %v1438_v60 = vld [vmem:[%s3513_s6 + $0x18] sm:$0xff] }
 0x2ee   : > { %v1395_v15 = vmul.f32 %v1975_v26, %v1385_v3  ;;  %v1363_v29 = vadd.f32 %v1355_v51, %v1299_v10  ;;  %v1364_v55 = vadd.f32 %v1356_v21, %v1300_v11  ;;  %v3679_v3 = vmov 0.0   ;;  %v1437_v48 = vld [vmem:[%s3513_s6 + $0x10] sm:$0xff]  ;;  %v3357_v30 = vpop.f32.mrb[1].mxu1  ;;  %v3680_v51 = vld [vmem:[#allocation34_spill] sm:$0xff] }
 0x2ef   : > { %v1229_v35 = vmul.f32 %v3674_v47, %v1205_v45  ;;  %v1230_v24 = vmul.f32 %v3674_v47, %v1206_v5  ;;  %v1318_v20 = vpop.permute.xlu1 %1317  ;;  %v3365_v45 = vpop.f32.mrb[2].mxu1 }
 0x2f0   : > { %v1322_v52 = vsel %vm611_vm6, %v3228_v53, %v1318_v20  ;;  %v1326_v41 = vsel %vm611_vm6, %v1318_v20, %v3228_v53  ;;  %v3367_v5 = vpop.f32.mrb[3].mxu1 }
 0x2f1   : > { %v1237_v16 = vadd.f32 %v1229_v35, %v1173_v13  ;;  %v1238_v63 = vadd.f32 %v1230_v24, %v1174_v17  ;;  %v1333_v23 = vmul.f32 %v1322_v52, %v2547_v34  ;;  %v1334_v19 = vmul.f32 %v1326_v41, %v3650_v39  ;;  %v3677_v39 = vld [vmem:[#allocation37_spill] sm:$0xff]  ;;  %v1457_v41 = vpop.permute.xlu0 %1456 }
 0x2f2   : > { %v1419_v18 = vmul.f32 %v3677_v39, %v1395_v15  ;;  %v1420_v22 = vmul.f32 %v3677_v39, %v1396_v9 }
 0x2f3   : > { %v1301_v44 = vadd.f32 %v1293_v54, %v1237_v16  ;;  %v1302_v2 = vadd.f32 %v1294_v37, %v1238_v63  ;;  %v1357_v7 = vmul.f32 %v3675_v8, %v1333_v23  ;;  %v1358_v46 = vmul.f32 %v3675_v8, %v1334_v19  ;;  %v1382_v59 = vpop.permute.xlu1 %1381 }
 0x2f4   : > { %v1386_v53 = vsel %vm652_vm7, %v3230_v38, %v1382_v59  ;;  %v1390_v34 = vsel %vm652_vm7, %v1382_v59, %v3230_v38  ;;  %v1427_v12 = vadd.f32 %v1419_v18, %v1363_v29  ;;  %v1428_v57 = vadd.f32 %v1420_v22, %v1364_v55  ;;  %v3681_v55 = vld [vmem:[#allocation36_spill] sm:$0xff] }
 0x2f5   : > { %v1397_v40 = vmul.f32 %v1975_v26, %v1386_v53  ;;  %v1398_v25 = vmul.f32 %v1976_v4, %v1390_v34  ;;  %v1365_v6 = vadd.f32 %v1357_v7, %v1301_v44  ;;  %v1366_v14 = vadd.f32 %v1358_v46, %v1302_v2  ;;  %v1824_v44 = vld [vmem:[%s3515_s8] ss:$0 sm:$0xff] }
 0x2f7   : > { %v1421_v61 = vmul.f32 %v3678_v1, %v1397_v40  ;;  %v1422_v33 = vmul.f32 %v3678_v1, %v1398_v25 }
 0x2f9   : > { %v1429_v31 = vadd.f32 %v1421_v61, %v1365_v6  ;;  %v1430_v36 = vadd.f32 %v1422_v33, %v1366_v14 }
 0x2fb   : > { %v1844_v58 = vpack.c.bf16 %v1430_v36, %v1428_v57  ;;  %v1846_v38 = vpack.c.bf16 %v1429_v31, %v1427_v12 }
 0x2fd   : > { %1845 = vmatprep.subr.bf16.mxu1 %v1844_v58 }
 0x2fe   : > { %1847 = vmatpush1.bf16.msra.mxu1 %v1846_v38 }
 0x301   : > { %1820 = vmatmul.mubr.msk.f32.vlgmr.msra.gmra.mrb[4].mxu1 %vm741_vm8, %v1435_v28  ;;  %v689_v28 = vld [vmem:[%s3511_s4 + $0x20] sm:$0xff] }
 0x302   : > { %1541 = vmatprep.mubr.f32.mxu1 %v3679_v3  ;;  %1816 = vmatmul.mubr.msk.f32.gmra.mrb[8].mxu0 %vm741_vm8, %v689_v28 }
 0x303   : > { %860 = vmatprep.mubr.f32.mxu0 %v3679_v3 }
 0x304   : > { %v1447_v27 = vpop.permute.xlu1 %1446 }
 0x305   : > { %1821 = vmatmul.mubr.msk.f32.gmra.mrb[6].mxu1 %vm741_vm8, %v1436_v0 }
 0x306   : > { %1547 = vmatprep.mubr.f32.mxu1 %v3679_v3 }
 0x308   : > { %v1452_v20 = vpop.permute.xlu1 %1451 }
 0x309   : > { %1822 = vmatmul.mubr.msk.f32.gmra.mrb[8].mxu1 %vm741_vm8, %v1437_v48  ;;  %v690_v48 = vld [vmem:[%s3511_s4 + $0x28] sm:$0xff] }
 0x30a   : > { %1553 = vmatprep.mubr.f32.mxu1 %v3679_v3  ;;  %1817 = vmatmul.mubr.msk.f32.gmra.mrb[10].mxu0 %vm741_vm8, %v690_v48 }
 0x30d   : > { %1823 = vmatmul.mubr.msk.f32.gmra.mrb[10].mxu1 %vm741_vm8, %v1438_v60 }
 0x3d4   : > { %v1537_v50 = vpop.f32.mrb[4].mxu1 }
 0x3d5   : > { %v3369_v49 = vadd.f32 %v1537_v50, %v1442_v43  ;;  %v1539_v54 = vpop.f32.mrb[5].mxu1 }
 0x3d6   : > { %v3371_v37 = vadd.f32 %v1539_v54, %v1442_v43  ;;  %v3682_v43 = vld [vmem:[#allocation10_spill] sm:$0xff] }
 0x3d8   : > { %v1560_v13 = vadd.f32 %v3371_v37, %v3369_v49  ;;  %v1543_v17 = vpop.f32.mrb[6].mxu1 }
 0x3d9   : > { %v3375_v47 = vadd.f32 %v1543_v17, %v1447_v27  ;;  %v1545_v35 = vpop.f32.mrb[7].mxu1 }
 0x3da   : > { %v3377_v24 = vadd.f32 %v1545_v35, %v1447_v27  ;;  %1561 = vadd.xlane.f32.xlu1 %v1560_v13 }
 0x3dc   : > { %v1563_v26 = vadd.f32 %v3377_v24, %v3375_v47  ;;  %v1549_v15 = vpop.f32.mrb[8].mxu1 }
 0x3dd   : > { %v3381_v4 = vadd.f32 %v1549_v15, %v1452_v20  ;;  %v1551_v9 = vpop.f32.mrb[9].mxu1 }
 0x3de   : > { %v3383_v52 = vadd.f32 %v1551_v9, %v1452_v20  ;;  %1564 = vadd.xlane.f32.xlu0 %v1563_v26 }
 0x3e0   : > { %v1566_v16 = vadd.f32 %v3383_v52, %v3381_v4  ;;  %v1555_v63 = vpop.f32.mrb[10].mxu1 }
 0x3e1   : > { %v3387_v23 = vadd.f32 %v1555_v63, %v1457_v41  ;;  %v1557_v19 = vpop.f32.mrb[11].mxu1 }
 0x3e2   : > { %v3389_v10 = vadd.f32 %v1557_v19, %v1457_v41  ;;  %1567 = vadd.xlane.f32.xlu0 %v1566_v16  ;;  %v698_v19 = vld [vmem:[%s3512_s5 + $0x28] sm:$0xff] }
 0x3e4   : > { %v1569_v11 = vadd.f32 %v3389_v10, %v3387_v23 }
 0x3e6   : > { %1570 = vadd.xlane.f32.xlu1 %v1569_v11  ;;  %v3419_v11 = vpop.f32.mrb[8].mxu0 }
 0x3f8   : > { %1601 = vrot.lane.b32.xlu0 %v1824_v44, %s2059_s24  ;;  %v3421_v44 = vpop.f32.mrb[9].mxu0 }
 0x467   : > { %v1562_v2 = vpop.xlane.xlu1 %1561 }
 0x468   : > { %v1573_v7 = vmul.f32 0.00390625, %v1562_v2  ;;  %v699_v2 = vld [vmem:[%s3512_s5 + $0x30] sm:$0xff] }
 0x46a   : > { %v1577_v21 = vmul.f32 %v1573_v7, %v3680_v51  ;;  %v697_v7 = vld [vmem:[%s3512_s5 + $0x20] sm:$0xff] }
 0x46b   : > { %v1565_v8 = vpop.xlane.xlu0 %1564 }
 0x46c   : > { %v1574_v46 = vmul.f32 0.00390625, %v1565_v8  ;;  %v1582_v22 = vsel %vm1581_vm9, %v1577_v21, 0.0  ;;  %v862_v8 = vpop.f32.mrb[10].mxu0 }
 0x46e   : > { %v1578_v59 = vmul.f32 %v1574_v46, %v3047_v32  ;;  %v864_v46 = vpop.f32.mrb[11].mxu0 }
 0x46f   : > { %v1568_v62 = vpop.xlane.xlu0 %1567 }
 0x470   : > { %v1575_v53 = vmul.f32 0.00390625, %v1568_v62  ;;  %v1583_v34 = vsel %vm1581_vm9, %v1578_v59, 0.0  ;;  %v700_v59 = vld [vmem:[%s3512_s5 + $0x38] sm:$0xff]  ;;  %v3683_v62 = vmov 1  }
 0x471   : > { %v1584_v29 = vadd.f32 %v1583_v34, %v1582_v22 }
 0x472   : > { %v1579_v39 = vmul.f32 %v1575_v53, %v3059_v42 }
 0x473   : > { %v1571_v18 = vpop.xlane.xlu1 %1570  ;;  %v1602_v58 = vpop.permute.xlu0 %1601 }
 0x474   : > { %v1585_v40 = vsel %vm1581_vm9, %v1579_v39, 0.0  ;;  %v1576_v25 = vmul.f32 0.00390625, %v1571_v18 }
 0x475   : > { %v1586_v14 = vadd.f32 %v1585_v40, %v1584_v29 }
 0x476   : > { %v1580_v6 = vmul.f32 %v1576_v25, %v3681_v55 }
 0x478   : > { %v1587_v1 = vsel %vm1581_vm9, %v1580_v6, 0.0 }
 0x479   : > { %v1588_v61 = vadd.f32 %v1587_v1, %v1586_v14 }
 0x47b   : > { %v1589_v33 = vrot.slane %v1588_v61, 4 }
 0x47d   : > { %v1590_v12 = vadd.f32 %v1589_v33, %v1588_v61 }
 0x47f   : > { %v1591_v31 = vrot.slane %v1590_v12, 2 }
 0x481   : > { %v1592_v57 = vadd.f32 %v1591_v31, %v1590_v12 }
 0x483   : > { %v1593_v36 = vrot.slane %v1592_v57, 1 }
 0x485   : > { %v1594_v38 = vadd.f32 %v1593_v36, %v1592_v57 }
 0x487   : > { %v1604_v0 = vadd.f32 %v1602_v58, %v1594_v38 }
 0x489   : > { %v1605_v60 = vmax.f32 %v1604_v0, 0.0 }
 0x48b   : > { %v1609_v50 = vrot.slane %v1605_v60, %v3682_v43 }
 0x48d   : > { %1611 = vrot.lane.b32.xlu1 %v1609_v50, %s2059_s24 }
 0x4ff   : > { %v1612_v27 = vpop.permute.xlu1 %1611 }
 0x500   : > { %v1614_v54 = vmul.f32 %v1612_v27, %v3680_v51  ;;  %v1615_v13 = vmul.f32 %v1612_v27, %v3047_v32  ;;  %v1616_v3 = vmul.f32 %v1612_v27, %v3059_v42  ;;  %v1617_v17 = vmul.f32 %v1612_v27, %v3681_v55 }
 0x502   : > { %1624 = vrot.lane.b32.xlu0 %v1615_v13, %s2060_s21  ;;  %1622 = vrot.lane.b32.xlu1 %v1614_v54, %s2060_s21 }
 0x506   : > { %1628 = vrot.lane.b32.xlu0 %v1617_v17, %s2060_s21  ;;  %1626 = vrot.lane.b32.xlu1 %v1616_v3, %s2060_s21  ;;  %s325_s21 = scalar_lea.vmem [#allocation2], %s1807_s17  ;;  %s1983_s17 = scalar_lea.vmem %s1982_s14, 2048 }
 0x507   : > { %s1741_s23 = sshll.u32 %s325_s21, 4  ;;  %s3461_s23 = int_to_ptr.vmem [resolvable:$true] %s1741_s23 }
 0x508   : > { %s1977_s24 = scalar_lea.vmem %s3461_s23, 1024  ;;  %p1984_p0 = scmp.lt.s32.totalorder %s3461_s23, %s1982_s14 }
 0x509   : > { %p1978_p11 = scmp.ne.s32.totalorder %s3461_s23, %s1977_s24  ;;  %p1985_p1 = scmp.lt.s32.totalorder %s1983_s17, %s1977_s24 }
 0x50b   : > { %p1979_p12 = pnand %p1978_p11, %p2151_p5  ;;  %p1986_p2 = por %p1985_p1, %p1984_p0 }
 0x50d   : > { %p1980_p13 = pneg %p1979_p12 }
 0x50f   : > { %p1987_p3 = pnand %p1986_p2, %p1980_p13 }
 0x574   : > { %v1625_v35 = vpop.permute.xlu0 %1624  ;;  %v1623_v20 = vpop.permute.xlu1 %1622 }
 0x575   : > { %v1638_v26 = vsel %vm1634_vm10, %v1625_v35, 0.0  ;;  %v1635_v15 = vsel %vm1634_vm10, %v1623_v20, 0.0 }
 0x576   : > { %1639 = vadd.xlane.f32.xlu0 %v1638_v26  ;;  %1636 = vadd.xlane.f32.xlu1 %v1635_v15 }
 0x578   : > { %v1629_v9 = vpop.permute.xlu0 %1628  ;;  %v1627_v41 = vpop.permute.xlu1 %1626 }
 0x579   : > { %v1644_v16 = vsel %vm1634_vm10, %v1629_v9, 0.0  ;;  %v1641_v63 = vsel %vm1634_vm10, %v1627_v41, 0.0 }
 0x57a   : > { %1645 = vadd.xlane.f32.xlu1 %v1644_v16  ;;  %1642 = vadd.xlane.f32.xlu0 %v1641_v63 }
 0x58b   : > { %728 = vperm.xlu1 %1956, %v698_v19  }
 0x58f   : > { %733 = vperm.xlu1 %1956, %v699_v2  }
 0x590   : > { %723 = vperm.xlu0 %1955, %v697_v7  }
 0x593   : > { %1957 = vset.pattern.permute.xlu1 %v3683_v62 }
 0x594   : > { %738 = vperm.xlu0 %1955, %v700_v59  }
 0x598   : > { %1958 = vset.pattern.permute.xlu0 %v3683_v62 }
 0x603   : > { %v1640_v21 = vpop.xlane.xlu0 %1639  ;;  %v1637_v53 = vpop.xlane.xlu1 %1636 }
 0x604   : > { %v1648_v34 = vadd.f32 %v1640_v21, %v3047_v32  ;;  %v1647_v39 = vadd.f32 %v1637_v53, %v3680_v51 }
 0x606   : > { %v1652_v18 = vsub.f32 0.0, %v1648_v34  ;;  %v1651_v22 = vsub.f32 0.0, %v1647_v39 }
 0x607   : > { %v1643_v40 = vpop.xlane.xlu0 %1642  ;;  %v1646_v25 = vpop.xlane.xlu1 %1645 }
 0x608   : > { %v1657_v29 = vmul.f32 1.442695, %v1652_v18  ;;  %v1655_v6 = vmul.f32 1.442695, %v1651_v22  ;;  %v1649_v14 = vadd.f32 %v1643_v40, %v3059_v42  ;;  %v1650_v1 = vadd.f32 %v1646_v25, %v3681_v55 }
 0x60a   : > { %1959 = vpow2.f32 %v1657_v29  ;;  %v1653_v61 = vsub.f32 0.0, %v1649_v14  ;;  %v1654_v33 = vsub.f32 0.0, %v1650_v1 }
 0x60b   : > { %1961 = vpow2.f32 %v1655_v6  ;;  %v729_v50 = vpop.permute.xlu1 %728 }
 0x60c   : > { %v1659_v12 = vmul.f32 1.442695, %v1653_v61  ;;  %v1661_v31 = vmul.f32 1.442695, %v1654_v33  ;;  %v863_v3 = vadd.f32 %v862_v8, %v729_v50  ;;  %v865_v17 = vadd.f32 %v864_v46, %v729_v50 }
 0x60e   : > { %1963 = vpow2.f32 %v1659_v12 }
 0x60f   : > { %1965 = vpow2.f32 %v1661_v31  ;;  %v724_v43 = vpop.permute.xlu0 %723  ;;  %v734_v54 = vpop.permute.xlu1 %733 }
 0x610   : > { %v857_v15 = vadd.f32 %v3419_v11, %v724_v43  ;;  %v859_v9 = vadd.f32 %v3421_v44, %v724_v43  ;;  %v869_v7 = vadd.f32 %v3351_v56, %v734_v54  ;;  %v871_v46 = vadd.f32 %v3357_v30, %v734_v54 }
 0x613   : > { %v739_v27 = vpop.permute.xlu0 %738 }
 0x614   : > { %v1960_v32 = vpop.eup %1959  ;;  %v875_v56 = vadd.f32 %v3365_v45, %v739_v27  ;;  %v877_v30 = vadd.f32 %v3367_v5, %v739_v27 }
 0x615   : > { %v1962_v51 = vpop.eup %1961  ;;  %v1664_v57 = vadd.f32 1.0, %v1960_v32 }
 0x616   : > { %v1663_v36 = vadd.f32 1.0, %v1962_v51 }
 0x617   : > { %1967 = vrcp.f32 %v1664_v57 }
 0x618   : > { %v1964_v58 = vpop.eup %1963  ;;  %1969 = vrcp.f32 %v1663_v36 }
 0x619   : > { %v1966_v38 = vpop.eup %1965  ;;  %v1665_v28 = vadd.f32 1.0, %v1964_v58 }
 0x61a   : > { %v1666_v42 = vadd.f32 1.0, %v1966_v38 }
 0x61b   : > { %1971 = vrcp.f32 %v1665_v28 }
 0x61c   : > { %1973 = vrcp.f32 %v1666_v42 }
 0x621   : > { %v1968_v55 = vpop.eup %1967 }
 0x622   : > { %v1970_v0 = vpop.eup %1969  ;;  %1682 = vperm.xlu0 %1958, %v1968_v55  }
 0x623   : > { %1677 = vperm.xlu1 %1957, %v1970_v0  }
 0x625   : > { %v1972_v48 = vpop.eup %1971 }
 0x626   : > { %v1974_v60 = vpop.eup %1973 }
 0x627   : > { %1687 = vperm.xlu1 %1957, %v1972_v48  }
 0x62b   : > { %1692 = vperm.xlu1 %1957, %v1974_v60  }
 0x6a1   : > { %v1683_v13 = vpop.permute.xlu0 %1682 }
 0x6a2   : > { %v1697_v35 = vmul.f32 %v1683_v13, %v3375_v47  ;;  %v1698_v20 = vmul.f32 %v1683_v13, %v3377_v24  ;;  %v1678_v26 = vpop.permute.xlu1 %1677 }
 0x6a3   : > { %v1695_v41 = vmul.f32 %v1678_v26, %v3369_v49  ;;  %v1696_v16 = vmul.f32 %v1678_v26, %v3371_v37 }
 0x6a4   : > { %v1705_v63 = vadd.f32 %v1697_v35, %v863_v3  ;;  %v1706_v19 = vadd.f32 %v1698_v20, %v865_v17 }
 0x6a5   : > { %v1703_v2 = vadd.f32 %v1695_v41, %v857_v15  ;;  %v1704_v8 = vadd.f32 %v1696_v16, %v859_v9 }
 0x6a6   : > { %v1713_v47 = vmax.f32 %v1705_v63, 0.0  ;;  %v1714_v59 = vmax.f32 %v1706_v19, 0.0  ;;  %v1688_v24 = vpop.permute.xlu1 %1687 }
 0x6a7   : > { %v1711_v62 = vmax.f32 %v1703_v2, 0.0  ;;  %v1712_v21 = vmax.f32 %v1704_v8, 0.0  ;;  %v1699_v11 = vmul.f32 %v1688_v24, %v3381_v4  ;;  %v1700_v49 = vmul.f32 %v1688_v24, %v3383_v52 }
 0x6a8   : > { %1721 = vst [vmem:[%s325_s21 + $0x10] sm:$0xff] %v1713_v47  ;;  %1722 = vst [vmem:[%s325_s21 + $0x18] sm:$0xff] %v1714_v59 }
 0x6a9   : > { %1719 = vst [vmem:[%s325_s21] sm:$0xff] %v1711_v62  ;;  %1720 = vst [vmem:[%s325_s21 + $0x8] sm:$0xff] %v1712_v21  ;;  %v1707_v37 = vadd.f32 %v1699_v11, %v869_v7  ;;  %v1708_v44 = vadd.f32 %v1700_v49, %v871_v46 }
 0x6aa   : > { %v1693_v53 = vpop.permute.xlu1 %1692 }
 0x6ab   : > { %v1715_v34 = vmax.f32 %v1707_v37, 0.0  ;;  %v1716_v39 = vmax.f32 %v1708_v44, 0.0  ;;  %v1701_v4 = vmul.f32 %v1693_v53, %v3387_v23  ;;  %v1702_v18 = vmul.f32 %v1693_v53, %v3389_v10 }
 0x6ad   : > { %1723 = vst [vmem:[%s325_s21 + $0x20] sm:$0xff] %v1715_v34  ;;  %1724 = vst [vmem:[%s325_s21 + $0x28] sm:$0xff] %v1716_v39  ;;  %v1709_v52 = vadd.f32 %v1701_v4, %v875_v56  ;;  %v1710_v22 = vadd.f32 %v1702_v18, %v877_v30 }
 0x6af   : > { %v1717_v45 = vmax.f32 %v1709_v52, 0.0  ;;  %v1718_v5 = vmax.f32 %v1710_v22, 0.0 }
 0x6b1   : > { %1725 = vst [vmem:[%s325_s21 + $0x30] sm:$0xff] %v1717_v45  ;;  %1726 = vst [vmem:[%s325_s21 + $0x38] sm:$0xff] %v1718_v5 }
 0x6b2   : > { %1990 = shalt.err (!%p1987_p3)
}
 0x6b3   : > { %s1991_s27 = scalar_lea.hbm %s3459_s22, 1024  ;;  %s1995_s29 = scalar_lea.hbm %s3516_s9, 2048 }
 0x6b4   : > { %p1992_p4 = scmp.ne.s32.totalorder %s3459_s22, %s1991_s27  ;;  %p1996_p9 = scmp.lt.u32.totalorder %s3459_s22, %s3516_s9 }
 0x6b5   : > { %p1997_p10 = scmp.lt.u32.totalorder %s1995_s29, %s1991_s27  ;;  %p1999_p12 = scmp.lt.u32.totalorder %s1991_s27, %s3459_s22 }
 0x6b6   : > { %p1993_p7 = pnand %p1992_p4, %p2151_p5 }
 0x6b7   : > { %p1998_p11 = por %p1997_p10, %p1996_p9 }
 0x6b8   : > { %p1994_p8 = pneg %p1993_p7 }
 0x6b9   : > { %p2000_p13 = por %p1999_p12, %p1998_p11 }
 0x6bb   : > { %p2001_p0 = pnand %p2000_p13, %p1994_p8 }
 0x6bd   : > { %2004 = shalt.err (!%p2001_p0)
}
 0x6be   : > { %s2062_s24 = smov 256  }
 0x6bf   : > { %1852 = dma.vmem_to_hbm [thread:$0]  (%p2151_p5), %s3461_s23, 1024, %s3459_s22, %s3465_s13, %s2062_s24, %s2062_s24, %s2046_s16  }
 0x6c0 PF: > { %p1858_p1 = scmp.ge.s32.totalorder %s2039_s12, 2  ;;  %s1756_s14 = sand.u32 1, %s2027_s30  }
 0x6c1   : > { %s1757_s17 = scalar_lea.sflag [#allocation3], %s1756_s14 }
 0x6c2   : > { %p1855_p2 = pnand %p1858_p1, %p2155_p6 }
 0x6c4   : > { %2022 = dma.done.wait (!%p1855_p2), %s1757_s17, 1024  }
 0x6c5   : > { %2024 = vsyncadd (!%p1855_p2), %s1757_s17, 4294966272  ;;  %p19_p3 = scmp.ge.s32.totalorder %s2138_s15, 4   ;;  %s3684_s30 = smov %s2031_s10 }
 0x6c6   : > { %s3685_s10 = smov %s2035_s11  ;;  %s3686_s11 = smov %s2149_s18 }
 0x6c7   : > { %s3687_s12 = smov %s2138_s15  ;;  %21 = sbr.rel (!%p19_p3) target bundleno = 3 (0x3), region = 91 }
 0x6ce   :  { %1762 = vsyncpa [#allocation3], 1 }
 0x6cf   :  { %1764 = vsyncpa [#allocation3 + $0x1], 1 }

</bundles_post_ra>
